<compile_context>
chip_gen: v6e
topology: v6e:2x2x1
jax: 0.10.0
libtpu: 0.0.40
codegen_flags: <defaults>
</compile_context>

<pallas_src>
import functools
import math

import jax
import jax.numpy as jnp
from jax.experimental import pallas as pl

# ---------------- model hyper-parameters (small synthetic config) ------------
NB_BINS = 64          # nb_bins == nb_output_bins (max_bin=None)
NB_CHANNELS = 2
HIDDEN = 32
NB_SAMPLES = 2
NB_FRAMES = 8

# zeta.nn.MambaBlock defaults
EXPAND = 2
D_INNER = EXPAND * HIDDEN            # 64
D_STATE = 16
D_CONV = 4
DT_RANK = math.ceil(HIDDEN / 16)     # 2
BN_EPS = 1e-5


# ---------------- shared math helpers -----------------------------------------
def _silu_kernel(x):
    # sigmoid via EUP reciprocal (exp + reciprocal both live on the EUP slot)
    return x * pl.reciprocal(1.0 + jnp.exp(-x), approx=True)


def _softplus_stable(x):
    # numerically-stable softplus, matches F.softplus semantics
    return jnp.maximum(x, 0.0) + jnp.log(1.0 + jnp.exp(-jnp.abs(x)))


def _sigmoid_ref(x):
    return 1.0 / (1.0 + jnp.exp(-x))


def _silu_ref(x):
    return x * _sigmoid_ref(x)


def fold_bn(gamma, beta, rmean, rvar, eps=BN_EPS):
    scale = gamma / jnp.sqrt(rvar + eps)
    shift = beta - rmean * scale
    return scale, shift


# ---------------- the single fused Pallas kernel ------------------------------
def _fused_forward_kernel(
        x_ref,          # (F, S*CB)            raw packed rows (also the mix)
        aff256_ref,     # (6, S*CB)   rows: in_sc, in_sh, bn3_s, bn3_b, out_sc, out_mn
        aff64_ref,      # (4, S*H)    rows: bn1_s, bn1_b, bn2_s, bn2_b
        aff128_ref,     # (K+3, S*Din) rows: conv tap 0..K-1, conv_b, b_dt, D
        w1_ref,         # (S*CB, S*H)          block-diag fc1
        win_ref,        # (S*H, 2*S*Din)       block-diag in_proj: [xin | res]
        wsp_ref,        # (S*Din, S*Din+2*S*N) block-diag x_proj(+dt): [delta|B|C]
        arep_ref,       # (F*N, S*Din)         A^T tiled over samples & frames
        wout_ref,       # (S*Din, S*H)         block-diag out_proj
        w2a_ref,        # (S*H, S*H)           block-diag fc2 (h1 path)
        w2b_ref,        # (S*H, S*H)           block-diag fc2 (mo+h1 path)
        w3_ref,         # (S*H, S*CB)          block-diag fc3
        o_ref,          # (F, S*CB)
        *, F, S, H, Din, N, K):
    f32 = jnp.float32
    SD = S * Din
    SN = S * N
    FN = F * N
    n_shift = N.bit_length() - 1            # N, Din are powers of two
    d_shift = Din.bit_length() - 1

    xrows = x_ref[...]                       # (F, S*CB)
    a256 = aff256_ref[...]
    a64 = aff64_ref[...]
    a128 = aff128_ref[...]

    # ---- stage 1: input norm + fc1 + bn1 (folded) + tanh
    xn = xrows * a256[0:1, :] + a256[1:2, :]
    h1 = jnp.dot(xn, w1_ref[...], preferred_element_type=f32)          # (F, S*H)
    h1 = jnp.tanh(h1 * a64[0:1, :] + a64[1:2, :])

    # ---- stage 2: MambaBlock (samples packed side-by-side in the lanes)
    xr = jnp.dot(h1, win_ref[...], preferred_element_type=f32)         # (F, 2*SD)
    xin = xr[:, :SD]                                                    # (F, SD)
    res = xr[:, SD:]                                                    # (F, SD)

    # causal depthwise conv1d: sublane rolls of a single full-lane vreg.
    # samples never mix (they live in disjoint lane blocks); wrapped rows are
    # killed by the frame >= shift mask, reproducing zero padding exactly.
    frame = jax.lax.broadcasted_iota(jnp.int32, (F, SD), 0)
    acc = xin * a128[K - 1:K, :] + a128[K:K + 1, :]                     # tap K-1, bias
    for k in range(K - 1):
        shift = K - 1 - k
        rolled = jnp.roll(xin, shift, axis=0)                           # static sublane roll
        acc = acc + jnp.where(frame >= shift, rolled, 0.0) * a128[k:k + 1, :]
    xc = _silu_kernel(acc)                                              # (F, SD)

    # x_proj with dt_proj folded in: one matmul -> [delta_pre | B | C]
    xbc = jnp.dot(xc, wsp_ref[...], preferred_element_type=f32)        # (F, SD+2*SN)
    delta = _softplus_stable(xbc[:, :SD] + a128[K + 1:K + 2, :])        # (F, SD)
    bm = xbc[:, SD:SD + SN]                                             # (F, SN)
    cm = xbc[:, SD + SN:]                                               # (F, SN)
    dxu = delta * xc                                                    # (F, SD)

    # ---- batched scan-operand construction (all OFF the serial chain) -------
    # 0/1 selection matrices generated in-kernel (no extra DMAs):
    #   repf  [f*N+n, f'] = (f == f')   : repeat each frame row N times
    #   m2    [f*N+n, s*N+m] = (m == n) : pick state n
    #   expand[s*N+m, s'*Din+d] = (s==s'): broadcast over the Din lanes of a sample
    #   repf_t[f, f*N+n]                : post-loop contraction over the state dim
    r_i = jax.lax.broadcasted_iota(jnp.int32, (FN, F), 0)
    c_i = jax.lax.broadcasted_iota(jnp.int32, (FN, F), 1)
    repf = (jnp.right_shift(r_i, n_shift) == c_i).astype(f32)           # (FN, F)
    m_r = jax.lax.broadcasted_iota(jnp.int32, (FN, SN), 0)
    m_c = jax.lax.broadcasted_iota(jnp.int32, (FN, SN), 1)
    m2 = (jnp.bitwise_and(m_r, N - 1) == jnp.bitwise_and(m_c, N - 1)).astype(f32)
    e_r = jax.lax.broadcasted_iota(jnp.int32, (SN, SD), 0)
    e_c = jax.lax.broadcasted_iota(jnp.int32, (SN, SD), 1)
    expand = (jnp.right_shift(e_r, n_shift)
              == jnp.right_shift(e_c, d_shift)).astype(f32)             # (SN, SD)
    t_r = jax.lax.broadcasted_iota(jnp.int32, (F, FN), 0)
    t_c = jax.lax.broadcasted_iota(jnp.int32, (F, FN), 1)
    repf_t = (t_r == jnp.right_shift(t_c, n_shift)).astype(f32)         # (F, FN)

    delta_rep = jnp.dot(repf, delta, preferred_element_type=f32)        # (FN, SD)
    dxu_rep = jnp.dot(repf, dxu, preferred_element_type=f32)            # (FN, SD)
    bm_b = jnp.dot(jnp.dot(repf, bm, preferred_element_type=f32) * m2,
                   expand, preferred_element_type=f32)                  # (FN, SD)
    cm_b = jnp.dot(jnp.dot(repf, cm, preferred_element_type=f32) * m2,
                   expand, preferred_element_type=f32)                  # (FN, SD)

    da_all = jnp.exp(delta_rep * arep_ref[...])                         # one batched EUP pass
    dbx_all = bm_b * dxu_rep                                            # batched outer products

    # ---- serial recurrence: F steps on a full-lane (N, S*Din) = (16,128) state
    h = dbx_all[0:N, :]                   # state starts at 0 for both samples
    hs_list = [h]
    for f in range(1, F):
        lo = f * N
        h = da_all[lo:lo + N, :] * h + dbx_all[lo:lo + N, :]
        hs_list.append(h)
    hs = jnp.concatenate(hs_list, axis=0)                               # (FN, SD)

    # C-contraction + row assembly off the chain: one MXU push
    y = jnp.dot(repf_t, hs * cm_b, preferred_element_type=f32)          # (F, SD)
    y = y + xc * a128[K + 2:K + 3, :]                                    # + D * xc
    y = y * _silu_kernel(res)                                            # gate
    mo = jnp.dot(y, wout_ref[...], preferred_element_type=f32)          # (F, S*H)

    # ---- stage 3: concat([h1, mo+h1]) @ W2^T == h1@W2a^T + (mo+h1)@W2b^T
    h2 = (jnp.dot(h1, w2a_ref[...], preferred_element_type=f32)
          + jnp.dot(mo + h1, w2b_ref[...], preferred_element_type=f32))
    h2 = jnp.maximum(h2 * a64[2:3, :] + a64[3:4, :], 0.0)               # (F, S*H)

    # ---- stage 4: fc3 + bn3 + output affine + relu(.) * mix
    y3 = jnp.dot(h2, w3_ref[...], preferred_element_type=f32)           # (F, S*CB)
    y3 = y3 * a256[2:3, :] + a256[3:4, :]
    y3 = y3 * a256[4:5, :] + a256[5:6, :]
    o_ref[...] = jnp.maximum(y3, 0.0) * xrows


# ---------------- full forward (Pallas) ---------------------------------------
def openunmix_mamba_forward(x, p):
    """x: (nb_samples, nb_channels, nb_bins, nb_frames) -> same shape."""
    S, C, Bn, F = x.shape
    CB = C * Bn
    H, Din, N, K, DT = HIDDEN, D_INNER, D_STATE, D_CONV, DT_RANK
    assert N & (N - 1) == 0 and Din & (Din - 1) == 0

    # one input relayout: frame rows, sample-packed lanes (feature = s*CB + c*Bn + b)
    x_pk = jnp.transpose(x, (3, 0, 1, 2)).reshape(F, S * CB).astype(jnp.float32)

    bn1_s, bn1_b = fold_bn(p["bn1_g"], p["bn1_b"], p["bn1_rm"], p["bn1_rv"])
    bn2_s, bn2_b = fold_bn(p["bn2_g"], p["bn2_b"], p["bn2_rm"], p["bn2_rv"])
    bn3_s, bn3_b = fold_bn(p["bn3_g"], p["bn3_b"], p["bn3_rm"], p["bn3_rv"])

    # ---- packed per-feature affine operands (3 small DMAs instead of ~13)
    aff256 = jnp.stack([
        jnp.tile(p["input_scale"], S * C),
        jnp.tile(p["input_mean"] * p["input_scale"], S * C),
        jnp.tile(bn3_s, S),
        jnp.tile(bn3_b, S),
        jnp.tile(p["output_scale"], S * C),
        jnp.tile(p["output_mean"], S * C),
    ])                                                                  # (6, S*CB)
    aff64 = jnp.stack([jnp.tile(bn1_s, S), jnp.tile(bn1_b, S),
                       jnp.tile(bn2_s, S), jnp.tile(bn2_b, S)])         # (4, S*H)
    aff128 = jnp.stack(
        [jnp.tile(p["conv_w"][:, 0, k], S) for k in range(K)]
        + [jnp.tile(p["conv_b"], S), jnp.tile(p["b_dt"], S), jnp.tile(p["D"], S)]
    )                                                                   # (K+3, S*Din)

    # ---- per-sample block-diagonal weights so the kernel stays lane-packed
    def bd(w):  # w: (in, out) for one sample (already transposed for right-mult)
        i, o = w.shape
        z = jnp.zeros((S * i, S * o), jnp.float32)
        for s in range(S):
            z = z.at[s * i:(s + 1) * i, s * o:(s + 1) * o].set(w)
        return z

    w1_bd = bd(jnp.transpose(p["W1"]))                                  # (S*CB, S*H)
    win_bd = jnp.concatenate(
        [bd(jnp.transpose(p["W_in"][:Din])),                            # xin path
         bd(jnp.transpose(p["W_in"][Din:]))], axis=1)                   # res path
    # fold dt_proj into x_proj: delta_pre = xc @ (W_dt @ W_x[:DT]).T + b_dt
    w_delta = jnp.dot(p["W_dt"], p["W_x"][:DT],
                      precision=jax.lax.Precision.HIGHEST)              # (Din, Din)
    wsp_bd = jnp.concatenate(
        [bd(jnp.transpose(w_delta)),
         bd(jnp.transpose(p["W_x"][DT:DT + N])),
         bd(jnp.transpose(p["W_x"][DT + N:]))], axis=1)                 # (S*Din, S*Din+2*S*N)
    a_t = jnp.transpose(-jnp.exp(p["A_log"]))                           # (N, Din)
    a_rep = jnp.tile(jnp.tile(a_t, (1, S)), (F, 1))                     # (F*N, S*Din)
    wout_bd = bd(jnp.transpose(p["W_out"]))                             # (S*Din, S*H)
    w2a_bd = bd(jnp.transpose(p["W2"][:, :H]))                          # (S*H, S*H)
    w2b_bd = bd(jnp.transpose(p["W2"][:, H:]))                          # (S*H, S*H)
    w3_bd = bd(jnp.transpose(p["W3"]))                                  # (S*H, S*CB)

    out_pk = pl.pallas_call(
        functools.partial(_fused_forward_kernel,
                          F=F, S=S, H=H, Din=Din, N=N, K=K),
        out_shape=jax.ShapeDtypeStruct((F, S * CB), jnp.float32),
    )(x_pk, aff256, aff64, aff128, w1_bd, win_bd, wsp_bd, a_rep,
      wout_bd, w2a_bd, w2b_bd, w3_bd)

    return jnp.transpose(out_pk.reshape(F, S, C, Bn), (1, 2, 3, 0))


# ---------------- plain-JAX reference (for correctness check) -----------------
def _mamba_ref(x, p):
    B, L, D = x.shape
    xin = x @ p["W_in"][:D_INNER].T
    res = x @ p["W_in"][D_INNER:].T
    xc = jnp.zeros_like(xin) + p["conv_b"]
    for k in range(D_CONV):
        shift = D_CONV - 1 - k
        shifted = jnp.pad(xin, ((0, 0), (shift, 0), (0, 0)))[:, :L, :]
        xc = xc + shifted * p["conv_w"][:, 0, k]
    xc = _silu_ref(xc)
    x_dbl = xc @ p["W_x"].T
    dlt = x_dbl[..., :DT_RANK]
    Bm = x_dbl[..., DT_RANK:DT_RANK + D_STATE]
    Cm = x_dbl[..., DT_RANK + D_STATE:]
    delta = jax.nn.softplus(dlt @ p["W_dt"].T + p["b_dt"])
    A = -jnp.exp(p["A_log"])
    ys = []
    for b in range(B):
        h = jnp.zeros((D_INNER, D_STATE), jnp.float32)
        yb = []
        for i in range(L):
            h = jnp.exp(delta[b, i][:, None] * A) * h \
                + (delta[b, i] * xc[b, i])[:, None] * Bm[b, i][None, :]
            yb.append(jnp.sum(h * Cm[b, i][None, :], axis=1))
        ys.append(jnp.stack(yb, axis=0))
    y = jnp.stack(ys, axis=0)
    y = y + xc * p["D"]
    y = y * _silu_ref(res)
    return y @ p["W_out"].T


def reference_forward(x, p):
    xp = jnp.transpose(x, (3, 0, 1, 2)).astype(jnp.float32)
    F_, S_, C_, Bn = xp.shape
    mix = xp
    xn = (xp[..., :NB_BINS] + p["input_mean"]) * p["input_scale"]
    h = xn.reshape(-1, C_ * NB_BINS) @ p["W1"].T
    h = (h - p["bn1_rm"]) / jnp.sqrt(p["bn1_rv"] + BN_EPS) * p["bn1_g"] + p["bn1_b"]
    h = jnp.tanh(h).reshape(F_, S_, HIDDEN)
    mo = _mamba_ref(jnp.transpose(h, (1, 0, 2)), p)
    mo = jnp.transpose(mo, (1, 0, 2))
    hc = jnp.concatenate([h, mo + h], axis=-1).reshape(-1, 2 * HIDDEN)
    h2 = hc @ p["W2"].T
    h2 = (h2 - p["bn2_rm"]) / jnp.sqrt(p["bn2_rv"] + BN_EPS) * p["bn2_g"] + p["bn2_b"]
    h2 = jnp.maximum(h2, 0.0)
    h3 = h2 @ p["W3"].T
    h3 = (h3 - p["bn3_rm"]) / jnp.sqrt(p["bn3_rv"] + BN_EPS) * p["bn3_g"] + p["bn3_b"]
    h3 = h3.reshape(F_, S_, C_, NB_BINS)
    h3 = p["output_scale"] * h3 + p["output_mean"]
    out = jnp.maximum(h3, 0.0) * mix
    return jnp.transpose(out, (1, 2, 3, 0))


# ---------------- deterministic parameter init --------------------------------
def make_params(key):
    ks = iter(jax.random.split(key, 32))

    def u(shape, scale):
        return jax.random.uniform(next(ks), shape, jnp.float32, -scale, scale)

    p = {}
    p["W1"] = u((HIDDEN, NB_CHANNELS * NB_BINS), (NB_CHANNELS * NB_BINS) ** -0.5)
    p["bn1_g"] = 1.0 + 0.1 * jax.random.normal(next(ks), (HIDDEN,), jnp.float32)
    p["bn1_b"] = 0.1 * jax.random.normal(next(ks), (HIDDEN,), jnp.float32)
    p["bn1_rm"] = 0.1 * jax.random.normal(next(ks), (HIDDEN,), jnp.float32)
    p["bn1_rv"] = jax.random.uniform(next(ks), (HIDDEN,), jnp.float32, 0.5, 1.5)
    # MambaBlock params
    p["W_in"] = u((2 * D_INNER, HIDDEN), HIDDEN ** -0.5)
    p["conv_w"] = u((D_INNER, 1, D_CONV), D_CONV ** -0.5)
    p["conv_b"] = u((D_INNER,), D_CONV ** -0.5)
    p["W_x"] = u((DT_RANK + 2 * D_STATE, D_INNER), D_INNER ** -0.5)
    p["W_dt"] = u((D_INNER, DT_RANK), DT_RANK ** -0.5)
    p["b_dt"] = u((D_INNER,), DT_RANK ** -0.5)
    p["A_log"] = jnp.log(jnp.tile(
        jnp.arange(1, D_STATE + 1, dtype=jnp.float32)[None, :], (D_INNER, 1)))
    p["D"] = jnp.ones((D_INNER,), jnp.float32)
    p["W_out"] = u((HIDDEN, D_INNER), D_INNER ** -0.5)
    # tail
    p["W2"] = u((HIDDEN, 2 * HIDDEN), (2 * HIDDEN) ** -0.5)
    p["bn2_g"] = 1.0 + 0.1 * jax.random.normal(next(ks), (HIDDEN,), jnp.float32)
    p["bn2_b"] = 0.1 * jax.random.normal(next(ks), (HIDDEN,), jnp.float32)
    p["bn2_rm"] = 0.1 * jax.random.normal(next(ks), (HIDDEN,), jnp.float32)
    p["bn2_rv"] = jax.random.uniform(next(ks), (HIDDEN,), jnp.float32, 0.5, 1.5)
    p["W3"] = u((NB_CHANNELS * NB_BINS, HIDDEN), HIDDEN ** -0.5)
    p["bn3_g"] = 1.0 + 0.1 * jax.random.normal(next(ks), (NB_CHANNELS * NB_BINS,), jnp.float32)
    p["bn3_b"] = 0.1 * jax.random.normal(next(ks), (NB_CHANNELS * NB_BINS,), jnp.float32)
    p["bn3_rm"] = 0.1 * jax.random.normal(next(ks), (NB_CHANNELS * NB_BINS,), jnp.float32)
    p["bn3_rv"] = jax.random.uniform(next(ks), (NB_CHANNELS * NB_BINS,), jnp.float32, 0.5, 1.5)
    p["input_mean"] = 0.1 * jax.random.normal(next(ks), (NB_BINS,), jnp.float32)
    p["input_scale"] = 1.0 + 0.1 * jax.random.normal(next(ks), (NB_BINS,), jnp.float32)
    p["output_scale"] = jnp.ones((NB_BINS,), jnp.float32)   # module default init
    p["output_mean"] = jnp.ones((NB_BINS,), jnp.float32)    # module default init
    return p


# ---------------- main ---------------------------------------------------------
if __name__ == "__main__":
    key = jax.random.PRNGKey(0)
    pkey, xkey = jax.random.split(key)
    params = make_params(pkey)
    x = jax.random.normal(
        xkey, (NB_SAMPLES, NB_CHANNELS, NB_BINS, NB_FRAMES), jnp.float32)

    fwd = jax.jit(openunmix_mamba_forward)
    out = jax.block_until_ready(fwd(x, params))

    assert out.shape == x.shape
    assert bool(jnp.all(jnp.isfinite(out)))

    # f32-accurate reference for the correctness check.  Tolerance allows for
    # MXU default-precision passes inside the kernel (reference runs "highest").
    with jax.default_matmul_precision("highest"):
        ref = reference_forward(x, params)
    err = float(jnp.max(jnp.abs(out - ref)))
    assert err < 3e-3, f"max abs diff vs reference too large: {err}"

    print("KERNEL_OK")
</pallas_src>

<mosaic_0001>
module attributes {stable_mosaic.version = 11 : i64} {
  func.func @_fused_forward_kernel(%arg0: memref<8x256xf32, #tpu.memory_space<vmem>>, %arg1: memref<6x256xf32, #tpu.memory_space<vmem>>, %arg2: memref<4x64xf32, #tpu.memory_space<vmem>>, %arg3: memref<7x128xf32, #tpu.memory_space<vmem>>, %arg4: memref<256x64xf32, #tpu.memory_space<vmem>>, %arg5: memref<64x256xf32, #tpu.memory_space<vmem>>, %arg6: memref<128x192xf32, #tpu.memory_space<vmem>>, %arg7: memref<128x128xf32, #tpu.memory_space<vmem>>, %arg8: memref<128x64xf32, #tpu.memory_space<vmem>>, %arg9: memref<64x64xf32, #tpu.memory_space<vmem>>, %arg10: memref<64x64xf32, #tpu.memory_space<vmem>>, %arg11: memref<64x256xf32, #tpu.memory_space<vmem>>, %arg12: memref<8x256xf32, #tpu.memory_space<vmem>>) attributes {dimension_semantics = [], scalar_prefetch = 0 : i64, scratch_operands = 0 : i64, tpu.core_type = #tpu.core_type<tc>} {
    %c0 = arith.constant 0 : index
    %c0_0 = arith.constant 0 : index
    %0 = vector.load %arg0[%c0, %c0_0] : memref<8x256xf32, #tpu.memory_space<vmem>>, vector<8x256xf32>
    %c0_1 = arith.constant 0 : index
    %c0_2 = arith.constant 0 : index
    %1 = vector.load %arg1[%c0_1, %c0_2] : memref<6x256xf32, #tpu.memory_space<vmem>>, vector<6x256xf32>
    %c0_3 = arith.constant 0 : index
    %c0_4 = arith.constant 0 : index
    %2 = vector.load %arg2[%c0_3, %c0_4] : memref<4x64xf32, #tpu.memory_space<vmem>>, vector<4x64xf32>
    %c0_5 = arith.constant 0 : index
    %c0_6 = arith.constant 0 : index
    %3 = vector.load %arg3[%c0_5, %c0_6] : memref<7x128xf32, #tpu.memory_space<vmem>>, vector<7x128xf32>
    %4 = vector.extract_strided_slice %1 {offsets = [0, 0], sizes = [1, 256], strides = [1, 1]} : vector<6x256xf32> to vector<1x256xf32>
    %5 = vector.broadcast %4 : vector<1x256xf32> to vector<8x256xf32>
    %6 = arith.mulf %0, %5 : vector<8x256xf32>
    %7 = vector.extract_strided_slice %1 {offsets = [1, 0], sizes = [1, 256], strides = [1, 1]} : vector<6x256xf32> to vector<1x256xf32>
    %8 = vector.broadcast %7 : vector<1x256xf32> to vector<8x256xf32>
    %9 = arith.addf %6, %8 : vector<8x256xf32>
    %c0_7 = arith.constant 0 : index
    %c0_8 = arith.constant 0 : index
    %10 = vector.load %arg4[%c0_7, %c0_8] : memref<256x64xf32, #tpu.memory_space<vmem>>, vector<256x64xf32>
    %cst = arith.constant dense<0.000000e+00> : vector<8x64xf32>
    %11 = tpu.matmul %9, %10, %cst {dimension_numbers = #tpu.dot_dimension_numbers<[1], [0], [0], [1], [0, 0, 1, 1], [], []>} : vector<8x256xf32>, vector<256x64xf32>, vector<8x64xf32> -> vector<8x64xf32>
    %12 = vector.extract_strided_slice %2 {offsets = [0, 0], sizes = [1, 64], strides = [1, 1]} : vector<4x64xf32> to vector<1x64xf32>
    %13 = vector.broadcast %12 : vector<1x64xf32> to vector<8x64xf32>
    %14 = arith.mulf %11, %13 : vector<8x64xf32>
    %15 = vector.extract_strided_slice %2 {offsets = [1, 0], sizes = [1, 64], strides = [1, 1]} : vector<4x64xf32> to vector<1x64xf32>
    %16 = vector.broadcast %15 : vector<1x64xf32> to vector<8x64xf32>
    %17 = arith.addf %14, %16 : vector<8x64xf32>
    %18 = math.tanh %17 : vector<8x64xf32>
    %c0_9 = arith.constant 0 : index
    %c0_10 = arith.constant 0 : index
    %19 = vector.load %arg5[%c0_9, %c0_10] : memref<64x256xf32, #tpu.memory_space<vmem>>, vector<64x256xf32>
    %cst_11 = arith.constant dense<0.000000e+00> : vector<8x256xf32>
    %20 = tpu.matmul %18, %19, %cst_11 {dimension_numbers = #tpu.dot_dimension_numbers<[1], [0], [0], [1], [0, 0, 1, 1], [], []>} : vector<8x64xf32>, vector<64x256xf32>, vector<8x256xf32> -> vector<8x256xf32>
    %21 = vector.extract_strided_slice %20 {offsets = [0, 0], sizes = [8, 128], strides = [1, 1]} : vector<8x256xf32> to vector<8x128xf32>
    %22 = vector.extract_strided_slice %20 {offsets = [0, 128], sizes = [8, 128], strides = [1, 1]} : vector<8x256xf32> to vector<8x128xf32>
    %23 = tpu.iota {dimensions = array<i32: 0>} : vector<8x128xi32>
    %24 = vector.extract_strided_slice %3 {offsets = [3, 0], sizes = [1, 128], strides = [1, 1]} : vector<7x128xf32> to vector<1x128xf32>
    %25 = vector.broadcast %24 : vector<1x128xf32> to vector<8x128xf32>
    %26 = arith.mulf %21, %25 : vector<8x128xf32>
    %27 = vector.extract_strided_slice %3 {offsets = [4, 0], sizes = [1, 128], strides = [1, 1]} : vector<7x128xf32> to vector<1x128xf32>
    %28 = vector.broadcast %27 : vector<1x128xf32> to vector<8x128xf32>
    %29 = arith.addf %26, %28 : vector<8x128xf32>
    %30 = vector.extract_strided_slice %21 {offsets = [5, 0], sizes = [3, 128], strides = [1, 1]} : vector<8x128xf32> to vector<3x128xf32>
    %31 = vector.extract_strided_slice %21 {offsets = [0, 0], sizes = [5, 128], strides = [1, 1]} : vector<8x128xf32> to vector<5x128xf32>
    %32 = tpu.concatenate %30, %31 in 0 : vector<3x128xf32>, vector<5x128xf32> -> vector<8x128xf32>
    %c3_i32 = arith.constant 3 : i32
    %33 = vector.broadcast %c3_i32 : i32 to vector<8x128xi32>
    %34 = arith.cmpi sge, %23, %33 : vector<8x128xi32>
    %cst_12 = arith.constant 0.000000e+00 : f32
    %35 = vector.broadcast %cst_12 : f32 to vector<8x128xf32>
    %36 = arith.select %34, %32, %35 : vector<8x128xi1>, vector<8x128xf32>
    %37 = vector.extract_strided_slice %3 {offsets = [0, 0], sizes = [1, 128], strides = [1, 1]} : vector<7x128xf32> to vector<1x128xf32>
    %38 = vector.broadcast %37 : vector<1x128xf32> to vector<8x128xf32>
    %39 = arith.mulf %36, %38 : vector<8x128xf32>
    %40 = arith.addf %29, %39 : vector<8x128xf32>
    %41 = vector.extract_strided_slice %21 {offsets = [6, 0], sizes = [2, 128], strides = [1, 1]} : vector<8x128xf32> to vector<2x128xf32>
    %42 = vector.extract_strided_slice %21 {offsets = [0, 0], sizes = [6, 128], strides = [1, 1]} : vector<8x128xf32> to vector<6x128xf32>
    %43 = tpu.concatenate %41, %42 in 0 : vector<2x128xf32>, vector<6x128xf32> -> vector<8x128xf32>
    %c2_i32 = arith.constant 2 : i32
    %44 = vector.broadcast %c2_i32 : i32 to vector<8x128xi32>
    %45 = arith.cmpi sge, %23, %44 : vector<8x128xi32>
    %cst_13 = arith.constant 0.000000e+00 : f32
    %46 = vector.broadcast %cst_13 : f32 to vector<8x128xf32>
    %47 = arith.select %45, %43, %46 : vector<8x128xi1>, vector<8x128xf32>
    %48 = vector.extract_strided_slice %3 {offsets = [1, 0], sizes = [1, 128], strides = [1, 1]} : vector<7x128xf32> to vector<1x128xf32>
    %49 = vector.broadcast %48 : vector<1x128xf32> to vector<8x128xf32>
    %50 = arith.mulf %47, %49 : vector<8x128xf32>
    %51 = arith.addf %40, %50 : vector<8x128xf32>
    %52 = vector.extract_strided_slice %21 {offsets = [7, 0], sizes = [1, 128], strides = [1, 1]} : vector<8x128xf32> to vector<1x128xf32>
    %53 = vector.extract_strided_slice %21 {offsets = [0, 0], sizes = [7, 128], strides = [1, 1]} : vector<8x128xf32> to vector<7x128xf32>
    %54 = tpu.concatenate %52, %53 in 0 : vector<1x128xf32>, vector<7x128xf32> -> vector<8x128xf32>
    %c1_i32 = arith.constant 1 : i32
    %55 = vector.broadcast %c1_i32 : i32 to vector<8x128xi32>
    %56 = arith.cmpi sge, %23, %55 : vector<8x128xi32>
    %cst_14 = arith.constant 0.000000e+00 : f32
    %57 = vector.broadcast %cst_14 : f32 to vector<8x128xf32>
    %58 = arith.select %56, %54, %57 : vector<8x128xi1>, vector<8x128xf32>
    %59 = vector.extract_strided_slice %3 {offsets = [2, 0], sizes = [1, 128], strides = [1, 1]} : vector<7x128xf32> to vector<1x128xf32>
    %60 = vector.broadcast %59 : vector<1x128xf32> to vector<8x128xf32>
    %61 = arith.mulf %58, %60 : vector<8x128xf32>
    %62 = arith.addf %51, %61 : vector<8x128xf32>
    %cst_15 = arith.constant 0.000000e+00 : f32
    %63 = vector.broadcast %cst_15 : f32 to vector<8x128xf32>
    %64 = arith.subf %63, %62 : vector<8x128xf32>
    %65 = math.exp %64 : vector<8x128xf32>
    %cst_16 = arith.constant 1.000000e+00 : f32
    %66 = vector.broadcast %cst_16 : f32 to vector<8x128xf32>
    %67 = arith.addf %66, %65 : vector<8x128xf32>
    %68 = tpu.reciprocal %67 {approx = true} : vector<8x128xf32> -> vector<8x128xf32>
    %69 = arith.mulf %62, %68 : vector<8x128xf32>
    %c0_17 = arith.constant 0 : index
    %c0_18 = arith.constant 0 : index
    %70 = vector.load %arg6[%c0_17, %c0_18] : memref<128x192xf32, #tpu.memory_space<vmem>>, vector<128x192xf32>
    %cst_19 = arith.constant dense<0.000000e+00> : vector<8x192xf32>
    %71 = tpu.matmul %69, %70, %cst_19 {dimension_numbers = #tpu.dot_dimension_numbers<[1], [0], [0], [1], [0, 0, 1, 1], [], []>} : vector<8x128xf32>, vector<128x192xf32>, vector<8x192xf32> -> vector<8x192xf32>
    %72 = vector.extract_strided_slice %71 {offsets = [0, 0], sizes = [8, 128], strides = [1, 1]} : vector<8x192xf32> to vector<8x128xf32>
    %73 = vector.extract_strided_slice %3 {offsets = [5, 0], sizes = [1, 128], strides = [1, 1]} : vector<7x128xf32> to vector<1x128xf32>
    %74 = vector.broadcast %73 : vector<1x128xf32> to vector<8x128xf32>
    %75 = arith.addf %72, %74 : vector<8x128xf32>
    %cst_20 = arith.constant 0.000000e+00 : f32
    %76 = vector.broadcast %cst_20 : f32 to vector<8x128xf32>
    %77 = arith.maximumf %75, %76 : vector<8x128xf32>
    %78 = math.absf %75 : vector<8x128xf32>
    %cst_21 = arith.constant 0.000000e+00 : f32
    %79 = vector.broadcast %cst_21 : f32 to vector<8x128xf32>
    %80 = arith.subf %79, %78 : vector<8x128xf32>
    %81 = math.exp %80 : vector<8x128xf32>
    %cst_22 = arith.constant 1.000000e+00 : f32
    %82 = vector.broadcast %cst_22 : f32 to vector<8x128xf32>
    %83 = arith.addf %82, %81 : vector<8x128xf32>
    %84 = math.log %83 : vector<8x128xf32>
    %85 = arith.addf %77, %84 : vector<8x128xf32>
    %86 = vector.extract_strided_slice %71 {offsets = [0, 128], sizes = [8, 32], strides = [1, 1]} : vector<8x192xf32> to vector<8x32xf32>
    %87 = vector.extract_strided_slice %71 {offsets = [0, 160], sizes = [8, 32], strides = [1, 1]} : vector<8x192xf32> to vector<8x32xf32>
    %88 = arith.mulf %85, %69 : vector<8x128xf32>
    %89 = tpu.iota {dimensions = array<i32: 0>} : vector<128x8xi32>
    %90 = tpu.iota {dimensions = array<i32: 1>} : vector<128x8xi32>
    %c4_i32 = arith.constant 4 : i32
    %91 = vector.broadcast %c4_i32 : i32 to vector<128x8xi32>
    %92 = arith.shrsi %89, %91 : vector<128x8xi32>
    %93 = arith.cmpi eq, %92, %90 : vector<128x8xi32>
    %94 = arith.extui %93 : vector<128x8xi1> to vector<128x8xi32>
    %95 = arith.sitofp %94 : vector<128x8xi32> to vector<128x8xf32>
    %96 = tpu.iota {dimensions = array<i32: 0>} : vector<128x32xi32>
    %97 = tpu.iota {dimensions = array<i32: 1>} : vector<128x32xi32>
    %c15_i32 = arith.constant 15 : i32
    %98 = vector.broadcast %c15_i32 : i32 to vector<128x32xi32>
    %99 = arith.andi %96, %98 : vector<128x32xi32>
    %c15_i32_23 = arith.constant 15 : i32
    %100 = vector.broadcast %c15_i32_23 : i32 to vector<128x32xi32>
    %101 = arith.andi %97, %100 : vector<128x32xi32>
    %102 = arith.cmpi eq, %99, %101 : vector<128x32xi32>
    %103 = arith.extui %102 : vector<128x32xi1> to vector<128x32xi32>
    %104 = arith.sitofp %103 : vector<128x32xi32> to vector<128x32xf32>
    %105 = tpu.iota {dimensions = array<i32: 0>} : vector<32x128xi32>
    %106 = tpu.iota {dimensions = array<i32: 1>} : vector<32x128xi32>
    %c4_i32_24 = arith.constant 4 : i32
    %107 = vector.broadcast %c4_i32_24 : i32 to vector<32x128xi32>
    %108 = arith.shrsi %105, %107 : vector<32x128xi32>
    %c6_i32 = arith.constant 6 : i32
    %109 = vector.broadcast %c6_i32 : i32 to vector<32x128xi32>
    %110 = arith.shrsi %106, %109 : vector<32x128xi32>
    %111 = arith.cmpi eq, %108, %110 : vector<32x128xi32>
    %112 = arith.extui %111 : vector<32x128xi1> to vector<32x128xi32>
    %113 = arith.sitofp %112 : vector<32x128xi32> to vector<32x128xf32>
    %114 = tpu.iota {dimensions = array<i32: 0>} : vector<8x128xi32>
    %115 = tpu.iota {dimensions = array<i32: 1>} : vector<8x128xi32>
    %c4_i32_25 = arith.constant 4 : i32
    %116 = vector.broadcast %c4_i32_25 : i32 to vector<8x128xi32>
    %117 = arith.shrsi %115, %116 : vector<8x128xi32>
    %118 = arith.cmpi eq, %114, %117 : vector<8x128xi32>
    %119 = arith.extui %118 : vector<8x128xi1> to vector<8x128xi32>
    %120 = arith.sitofp %119 : vector<8x128xi32> to vector<8x128xf32>
    %cst_26 = arith.constant dense<0.000000e+00> : vector<128x128xf32>
    %121 = tpu.matmul %95, %85, %cst_26 {dimension_numbers = #tpu.dot_dimension_numbers<[1], [0], [0], [1], [0, 0, 1, 1], [], []>} : vector<128x8xf32>, vector<8x128xf32>, vector<128x128xf32> -> vector<128x128xf32>
    %cst_27 = arith.constant dense<0.000000e+00> : vector<128x128xf32>
    %122 = tpu.matmul %95, %88, %cst_27 {dimension_numbers = #tpu.dot_dimension_numbers<[1], [0], [0], [1], [0, 0, 1, 1], [], []>} : vector<128x8xf32>, vector<8x128xf32>, vector<128x128xf32> -> vector<128x128xf32>
    %cst_28 = arith.constant dense<0.000000e+00> : vector<128x32xf32>
    %123 = tpu.matmul %95, %86, %cst_28 {dimension_numbers = #tpu.dot_dimension_numbers<[1], [0], [0], [1], [0, 0, 1, 1], [], []>} : vector<128x8xf32>, vector<8x32xf32>, vector<128x32xf32> -> vector<128x32xf32>
    %124 = arith.mulf %123, %104 : vector<128x32xf32>
    %cst_29 = arith.constant dense<0.000000e+00> : vector<128x128xf32>
    %125 = tpu.matmul %124, %113, %cst_29 {dimension_numbers = #tpu.dot_dimension_numbers<[1], [0], [0], [1], [0, 0, 1, 1], [], []>} : vector<128x32xf32>, vector<32x128xf32>, vector<128x128xf32> -> vector<128x128xf32>
    %cst_30 = arith.constant dense<0.000000e+00> : vector<128x32xf32>
    %126 = tpu.matmul %95, %87, %cst_30 {dimension_numbers = #tpu.dot_dimension_numbers<[1], [0], [0], [1], [0, 0, 1, 1], [], []>} : vector<128x8xf32>, vector<8x32xf32>, vector<128x32xf32> -> vector<128x32xf32>
    %127 = arith.mulf %126, %104 : vector<128x32xf32>
    %cst_31 = arith.constant dense<0.000000e+00> : vector<128x128xf32>
    %128 = tpu.matmul %127, %113, %cst_31 {dimension_numbers = #tpu.dot_dimension_numbers<[1], [0], [0], [1], [0, 0, 1, 1], [], []>} : vector<128x32xf32>, vector<32x128xf32>, vector<128x128xf32> -> vector<128x128xf32>
    %c0_32 = arith.constant 0 : index
    %c0_33 = arith.constant 0 : index
    %129 = vector.load %arg7[%c0_32, %c0_33] : memref<128x128xf32, #tpu.memory_space<vmem>>, vector<128x128xf32>
    %130 = arith.mulf %121, %129 : vector<128x128xf32>
    %131 = math.exp %130 : vector<128x128xf32>
    %132 = arith.mulf %125, %122 : vector<128x128xf32>
    %133 = vector.extract_strided_slice %132 {offsets = [0, 0], sizes = [16, 128], strides = [1, 1]} : vector<128x128xf32> to vector<16x128xf32>
    %134 = vector.extract_strided_slice %131 {offsets = [16, 0], sizes = [16, 128], strides = [1, 1]} : vector<128x128xf32> to vector<16x128xf32>
    %135 = arith.mulf %134, %133 : vector<16x128xf32>
    %136 = vector.extract_strided_slice %132 {offsets = [16, 0], sizes = [16, 128], strides = [1, 1]} : vector<128x128xf32> to vector<16x128xf32>
    %137 = arith.addf %135, %136 : vector<16x128xf32>
    %138 = vector.extract_strided_slice %131 {offsets = [32, 0], sizes = [16, 128], strides = [1, 1]} : vector<128x128xf32> to vector<16x128xf32>
    %139 = arith.mulf %138, %137 : vector<16x128xf32>
    %140 = vector.extract_strided_slice %132 {offsets = [32, 0], sizes = [16, 128], strides = [1, 1]} : vector<128x128xf32> to vector<16x128xf32>
    %141 = arith.addf %139, %140 : vector<16x128xf32>
    %142 = vector.extract_strided_slice %131 {offsets = [48, 0], sizes = [16, 128], strides = [1, 1]} : vector<128x128xf32> to vector<16x128xf32>
    %143 = arith.mulf %142, %141 : vector<16x128xf32>
    %144 = vector.extract_strided_slice %132 {offsets = [48, 0], sizes = [16, 128], strides = [1, 1]} : vector<128x128xf32> to vector<16x128xf32>
    %145 = arith.addf %143, %144 : vector<16x128xf32>
    %146 = vector.extract_strided_slice %131 {offsets = [64, 0], sizes = [16, 128], strides = [1, 1]} : vector<128x128xf32> to vector<16x128xf32>
    %147 = arith.mulf %146, %145 : vector<16x128xf32>
    %148 = vector.extract_strided_slice %132 {offsets = [64, 0], sizes = [16, 128], strides = [1, 1]} : vector<128x128xf32> to vector<16x128xf32>
    %149 = arith.addf %147, %148 : vector<16x128xf32>
    %150 = vector.extract_strided_slice %131 {offsets = [80, 0], sizes = [16, 128], strides = [1, 1]} : vector<128x128xf32> to vector<16x128xf32>
    %151 = arith.mulf %150, %149 : vector<16x128xf32>
    %152 = vector.extract_strided_slice %132 {offsets = [80, 0], sizes = [16, 128], strides = [1, 1]} : vector<128x128xf32> to vector<16x128xf32>
    %153 = arith.addf %151, %152 : vector<16x128xf32>
    %154 = vector.extract_strided_slice %131 {offsets = [96, 0], sizes = [16, 128], strides = [1, 1]} : vector<128x128xf32> to vector<16x128xf32>
    %155 = arith.mulf %154, %153 : vector<16x128xf32>
    %156 = vector.extract_strided_slice %132 {offsets = [96, 0], sizes = [16, 128], strides = [1, 1]} : vector<128x128xf32> to vector<16x128xf32>
    %157 = arith.addf %155, %156 : vector<16x128xf32>
    %158 = vector.extract_strided_slice %131 {offsets = [112, 0], sizes = [16, 128], strides = [1, 1]} : vector<128x128xf32> to vector<16x128xf32>
    %159 = arith.mulf %158, %157 : vector<16x128xf32>
    %160 = vector.extract_strided_slice %132 {offsets = [112, 0], sizes = [16, 128], strides = [1, 1]} : vector<128x128xf32> to vector<16x128xf32>
    %161 = arith.addf %159, %160 : vector<16x128xf32>
    %162 = tpu.concatenate %133, %137, %141, %145, %149, %153, %157, %161 in 0 : vector<16x128xf32>, vector<16x128xf32>, vector<16x128xf32>, vector<16x128xf32>, vector<16x128xf32>, vector<16x128xf32>, vector<16x128xf32>, vector<16x128xf32> -> vector<128x128xf32>
    %163 = arith.mulf %162, %128 : vector<128x128xf32>
    %cst_34 = arith.constant dense<0.000000e+00> : vector<8x128xf32>
    %164 = tpu.matmul %120, %163, %cst_34 {dimension_numbers = #tpu.dot_dimension_numbers<[1], [0], [0], [1], [0, 0, 1, 1], [], []>} : vector<8x128xf32>, vector<128x128xf32>, vector<8x128xf32> -> vector<8x128xf32>
    %165 = vector.extract_strided_slice %3 {offsets = [6, 0], sizes = [1, 128], strides = [1, 1]} : vector<7x128xf32> to vector<1x128xf32>
    %166 = vector.broadcast %165 : vector<1x128xf32> to vector<8x128xf32>
    %167 = arith.mulf %69, %166 : vector<8x128xf32>
    %168 = arith.addf %164, %167 : vector<8x128xf32>
    %cst_35 = arith.constant 0.000000e+00 : f32
    %169 = vector.broadcast %cst_35 : f32 to vector<8x128xf32>
    %170 = arith.subf %169, %22 : vector<8x128xf32>
    %171 = math.exp %170 : vector<8x128xf32>
    %cst_36 = arith.constant 1.000000e+00 : f32
    %172 = vector.broadcast %cst_36 : f32 to vector<8x128xf32>
    %173 = arith.addf %172, %171 : vector<8x128xf32>
    %174 = tpu.reciprocal %173 {approx = true} : vector<8x128xf32> -> vector<8x128xf32>
    %175 = arith.mulf %22, %174 : vector<8x128xf32>
    %176 = arith.mulf %168, %175 : vector<8x128xf32>
    %c0_37 = arith.constant 0 : index
    %c0_38 = arith.constant 0 : index
    %177 = vector.load %arg8[%c0_37, %c0_38] : memref<128x64xf32, #tpu.memory_space<vmem>>, vector<128x64xf32>
    %cst_39 = arith.constant dense<0.000000e+00> : vector<8x64xf32>
    %178 = tpu.matmul %176, %177, %cst_39 {dimension_numbers = #tpu.dot_dimension_numbers<[1], [0], [0], [1], [0, 0, 1, 1], [], []>} : vector<8x128xf32>, vector<128x64xf32>, vector<8x64xf32> -> vector<8x64xf32>
    %c0_40 = arith.constant 0 : index
    %c0_41 = arith.constant 0 : index
    %179 = vector.load %arg9[%c0_40, %c0_41] : memref<64x64xf32, #tpu.memory_space<vmem>>, vector<64x64xf32>
    %cst_42 = arith.constant dense<0.000000e+00> : vector<8x64xf32>
    %180 = tpu.matmul %18, %179, %cst_42 {dimension_numbers = #tpu.dot_dimension_numbers<[1], [0], [0], [1], [0, 0, 1, 1], [], []>} : vector<8x64xf32>, vector<64x64xf32>, vector<8x64xf32> -> vector<8x64xf32>
    %181 = arith.addf %178, %18 : vector<8x64xf32>
    %c0_43 = arith.constant 0 : index
    %c0_44 = arith.constant 0 : index
    %182 = vector.load %arg10[%c0_43, %c0_44] : memref<64x64xf32, #tpu.memory_space<vmem>>, vector<64x64xf32>
    %cst_45 = arith.constant dense<0.000000e+00> : vector<8x64xf32>
    %183 = tpu.matmul %181, %182, %cst_45 {dimension_numbers = #tpu.dot_dimension_numbers<[1], [0], [0], [1], [0, 0, 1, 1], [], []>} : vector<8x64xf32>, vector<64x64xf32>, vector<8x64xf32> -> vector<8x64xf32>
    %184 = arith.addf %180, %183 : vector<8x64xf32>
    %185 = vector.extract_strided_slice %2 {offsets = [2, 0], sizes = [1, 64], strides = [1, 1]} : vector<4x64xf32> to vector<1x64xf32>
    %186 = vector.broadcast %185 : vector<1x64xf32> to vector<8x64xf32>
    %187 = arith.mulf %184, %186 : vector<8x64xf32>
    %188 = vector.extract_strided_slice %2 {offsets = [3, 0], sizes = [1, 64], strides = [1, 1]} : vector<4x64xf32> to vector<1x64xf32>
    %189 = vector.broadcast %188 : vector<1x64xf32> to vector<8x64xf32>
    %190 = arith.addf %187, %189 : vector<8x64xf32>
    %cst_46 = arith.constant 0.000000e+00 : f32
    %191 = vector.broadcast %cst_46 : f32 to vector<8x64xf32>
    %192 = arith.maximumf %190, %191 : vector<8x64xf32>
    %c0_47 = arith.constant 0 : index
    %c0_48 = arith.constant 0 : index
    %193 = vector.load %arg11[%c0_47, %c0_48] : memref<64x256xf32, #tpu.memory_space<vmem>>, vector<64x256xf32>
    %cst_49 = arith.constant dense<0.000000e+00> : vector<8x256xf32>
    %194 = tpu.matmul %192, %193, %cst_49 {dimension_numbers = #tpu.dot_dimension_numbers<[1], [0], [0], [1], [0, 0, 1, 1], [], []>} : vector<8x64xf32>, vector<64x256xf32>, vector<8x256xf32> -> vector<8x256xf32>
    %195 = vector.extract_strided_slice %1 {offsets = [2, 0], sizes = [1, 256], strides = [1, 1]} : vector<6x256xf32> to vector<1x256xf32>
    %196 = vector.broadcast %195 : vector<1x256xf32> to vector<8x256xf32>
    %197 = arith.mulf %194, %196 : vector<8x256xf32>
    %198 = vector.extract_strided_slice %1 {offsets = [3, 0], sizes = [1, 256], strides = [1, 1]} : vector<6x256xf32> to vector<1x256xf32>
    %199 = vector.broadcast %198 : vector<1x256xf32> to vector<8x256xf32>
    %200 = arith.addf %197, %199 : vector<8x256xf32>
    %201 = vector.extract_strided_slice %1 {offsets = [4, 0], sizes = [1, 256], strides = [1, 1]} : vector<6x256xf32> to vector<1x256xf32>
    %202 = vector.broadcast %201 : vector<1x256xf32> to vector<8x256xf32>
    %203 = arith.mulf %200, %202 : vector<8x256xf32>
    %204 = vector.extract_strided_slice %1 {offsets = [5, 0], sizes = [1, 256], strides = [1, 1]} : vector<6x256xf32> to vector<1x256xf32>
    %205 = vector.broadcast %204 : vector<1x256xf32> to vector<8x256xf32>
    %206 = arith.addf %203, %205 : vector<8x256xf32>
    %cst_50 = arith.constant 0.000000e+00 : f32
    %207 = vector.broadcast %cst_50 : f32 to vector<8x256xf32>
    %208 = arith.maximumf %206, %207 : vector<8x256xf32>
    %209 = arith.mulf %208, %0 : vector<8x256xf32>
    %c0_51 = arith.constant 0 : index
    %c0_52 = arith.constant 0 : index
    %210 = vector.load %arg12[%c0_51, %c0_52] : memref<8x256xf32, #tpu.memory_space<vmem>>, vector<8x256xf32>
    tpu.vector_store %arg12[%c0_51, %c0_52], %209 {strides = array<i32>} : memref<8x256xf32, #tpu.memory_space<vmem>>, vector<8x256xf32>,
    return
  }
}

</mosaic_0001>

<bundles_post_ra>
// kernel: tile.142
= control target key start
LH: loop header
LB: loop body
LE: loop exit
PB: predicated region body
PF: predicated region fallthrough
CT: control target
= control target key end

     0   :  { %s22_s0 = inlined_call_operand.vmem [shape: f32[64], index: 0, kind: input, shape index: {}]   ;;  %s23_s1 = inlined_call_operand.vmem [shape: f32[2,64], index: 1, kind: output, shape index: {}]  }
   0x1   :  { %v4_v0 = vld [vmem:[%s22_s0] ss:$0 sm:$0xff] }
   0x2   :  { %5 = vst [vmem:[%s23_s1] sm:$0x3] %v4_v0 }

// kernel: tile.164
= control target key start
LH: loop header
LB: loop body
LE: loop exit
PB: predicated region body
PF: predicated region fallthrough
CT: control target
= control target key end

     0   :  { %vm8_vm0 = vcmask 523264   ;;  %vm14_vm1 = vcmask 1048064   ;;  %s42_s0 = inlined_call_operand.vmem [shape: f32[2,64], index: 0, kind: input, shape index: {}]   ;;  %s43_s1 = inlined_call_operand.vmem [shape: f32[1,128], index: 1, kind: output, shape index: {}]  }
   0x1   :  { %v5_v0 = vld [vmem:[%s42_s0] sm:$0x3]  ;;  %s25_s0 = smov 64  }
   0x2   :  { %6 = vst [vmem:[#allocation1] sm:$0x3] %v5_v0 }
   0x9   :  { %v11_v1 = vld [vmem:[#allocation1 + $0x1] sm:$0x1]   ;;  %v7_v2 = vld [vmem:[#allocation1] sm:$0x1]  }
   0xa   :  { %12 = vrot.lane.b32.xlu0 %v11_v1, %s25_s0  ;;  %9 = vst.msk [vmem:[#allocation0] sm:$0x1] %vm8_vm0, %v7_v2  }
  0x7c   :  { %v13_v3 = vpop.permute.xlu0 %12  }
  0x7d   :  { %15 = vst.msk [vmem:[#allocation0] sm:$0x1] %vm14_vm1, %v13_v3  }
  0x84   :  { %v20_v4 = vld [vmem:[#allocation0] sm:$0x1] }
  0x85   :  { %23 = vst [vmem:[%s43_s1] sm:$0x1] %v20_v4 }

// kernel: tile.123
= control target key start
LH: loop header
LB: loop body
LE: loop exit
PB: predicated region body
PF: predicated region fallthrough
CT: control target
= control target key end

     0   :  { %s22_s0 = inlined_call_operand.vmem [shape: f32[32], index: 0, kind: input, shape index: {}]   ;;  %s23_s1 = inlined_call_operand.vmem [shape: f32[2,32], index: 1, kind: output, shape index: {}]  }
   0x1   :  { %v4_v0 = vld [vmem:[%s22_s0] ss:$0 sm:$0xff] }
   0x2   :  { %5 = vst [vmem:[%s23_s1] sm:$0x3] %v4_v0 }

// kernel: tile.136
= control target key start
LH: loop header
LB: loop body
LE: loop exit
PB: predicated region body
PF: predicated region fallthrough
CT: control target
= control target key end

     0   :  { %vm8_vm0 = vcmask 261120   ;;  %vm14_vm1 = vcmask 523520   ;;  %s42_s0 = inlined_call_operand.vmem [shape: f32[2,32], index: 0, kind: input, shape index: {}]   ;;  %s43_s1 = inlined_call_operand.vmem [shape: f32[1,64], index: 1, kind: output, shape index: {}]  }
   0x1   :  { %v5_v0 = vld [vmem:[%s42_s0] sm:$0x3]  ;;  %s25_s0 = smov 32  }
   0x2   :  { %6 = vst [vmem:[#allocation1] sm:$0x3] %v5_v0 }
   0x9   :  { %v11_v1 = vld [vmem:[#allocation1 + $0x1] sm:$0x1]   ;;  %v7_v2 = vld [vmem:[#allocation1] sm:$0x1]  }
   0xa   :  { %12 = vrot.lane.b32.xlu0 %v11_v1, %s25_s0  ;;  %9 = vst.msk [vmem:[#allocation0] sm:$0x1] %vm8_vm0, %v7_v2  }
  0x7c   :  { %v13_v3 = vpop.permute.xlu0 %12  }
  0x7d   :  { %15 = vst.msk [vmem:[#allocation0] sm:$0x1] %vm14_vm1, %v13_v3  }
  0x84   :  { %v20_v4 = vld [vmem:[#allocation0] sm:$0x1] }
  0x85   :  { %23 = vst [vmem:[%s43_s1] sm:$0x1] %v20_v4 }

// kernel: tile.101
= control target key start
LH: loop header
LB: loop body
LE: loop exit
PB: predicated region body
PF: predicated region fallthrough
CT: control target
= control target key end

     0   :  { %s22_s0 = inlined_call_operand.vmem [shape: f32[128], index: 0, kind: input, shape index: {}]   ;;  %s23_s1 = inlined_call_operand.vmem [shape: f32[2,128], index: 1, kind: output, shape index: {}]  }
   0x1   :  { %v4_v0 = vld [vmem:[%s22_s0] ss:$0 sm:$0xff] }
   0x2   :  { %5 = vst [vmem:[%s23_s1] sm:$0x3] %v4_v0 }

// kernel: mul.7
= control target key start
LH: loop header
LB: loop body
LE: loop exit
PB: predicated region body
PF: predicated region fallthrough
CT: control target
= control target key end

     0   :  { %s34_s0 = inlined_call_operand.vmem [shape: f32[64], index: 0, kind: input, shape index: {}]   ;;  %s35_s1 = inlined_call_operand.vmem [shape: f32[64], index: 1, kind: input, shape index: {}]   ;;  %s36_s2 = inlined_call_operand.vmem [shape: f32[64], index: 2, kind: output, shape index: {}]  }
   0x1   :  { %v3_v0 = vld [vmem:[%s34_s0] sm:$0x1] }
   0x2   :  { %v4_v1 = vld [vmem:[%s35_s1] sm:$0x1] }
   0x3   :  { %v7_v2 = vmul.f32 %v4_v1, %v3_v0 }
   0x5   :  { %9 = vst [vmem:[%s36_s2] sm:$0x1] %v7_v2 }

// kernel: tile.97
= control target key start
LH: loop header
LB: loop body
LE: loop exit
PB: predicated region body
PF: predicated region fallthrough
CT: control target
= control target key end

     0   :  { %s22_s0 = inlined_call_operand.vmem [shape: f32[64], index: 0, kind: input, shape index: {}]   ;;  %s23_s1 = inlined_call_operand.vmem [shape: f32[4,64], index: 1, kind: output, shape index: {}]  }
   0x1   :  { %v4_v0 = vld [vmem:[%s22_s0] ss:$0 sm:$0xff] }
   0x2   :  { %5 = vst [vmem:[%s23_s1] sm:$0xf] %v4_v0 }

// kernel: tile.115
= control target key start
LH: loop header
LB: loop body
LE: loop exit
PB: predicated region body
PF: predicated region fallthrough
CT: control target
= control target key end

     0   :  { %s7_s8 = smov 3  ;;  %vm9_vm0 = vcmask 523264   ;;  %s34_s9 = smov 64   ;;  %vm16_vm1 = vcmask 1048064   ;;  %s54_s0 = inlined_call_operand.vmem [shape: f32[4,64], index: 0, kind: input, shape index: {}]   ;;  %s55_s1 = inlined_call_operand.vmem [shape: f32[1,256], index: 1, kind: output, shape index: {}]  }
   0x1   :  { %v5_v0 = vld [vmem:[%s54_s0] sm:$0xf]  ;;  %s12_s0 = smov 3 }
   0x2   :  { %6 = vst [vmem:[#allocation1] sm:$0xf] %v5_v0 }
   0x9   :  { %v13_v1 = vld [vmem:[#allocation1 + $0x1] ss:$2 sm:%s12_s0]   ;;  %v8_v2 = vld [vmem:[#allocation1] ss:$2 sm:%s7_s8]  }
   0xa   :  { %14 = vrot.lane.b32.xlu0 %v13_v1, %s34_s9  ;;  %10 = vst.msk [vmem:[#allocation0] ss:$8 sm:$0x3] %vm9_vm0, %v8_v2  }
  0x7c   :  { %v15_v3 = vpop.permute.xlu0 %14  }
  0x7d   :  { %17 = vst.msk [vmem:[#allocation0] ss:$8 sm:$0x3] %vm16_vm1, %v15_v3  }
  0x84   :  { %v22_v4 = vld [vmem:[#allocation0] sm:$0x1]  ;;  %v27_v5 = vld [vmem:[#allocation0 + $0x8] sm:$0x1] }
  0x85   :  { %25 = vst [vmem:[%s55_s1] sm:$0x1] %v22_v4  ;;  %32 = vst [vmem:[%s55_s1 + $0x1] sm:$0x1] %v27_v5 }

// kernel: openunmix_mamba_forward.1
= control target key start
LH: loop header
LB: loop body
LE: loop exit
PB: predicated region body
PF: predicated region fallthrough
CT: control target
= control target key end

     0   :  { %v47_v3 = vlaneseq  ;;  %v2920_v55 = vmov 0.0   ;;  %vm196_vm0 = vcmask 523264   ;;  %vm607_vm5 = vcmask 64512   ;;  %s4135_s4 = inlined_call_operand.vmem [shape: f32[256,64], index: 4, kind: input, shape index: {}]   ;;  %s4136_s0 = inlined_call_operand.vmem [shape: f32[8,256], index: 0, kind: input, shape index: {}]   ;;  %s4137_s1 = inlined_call_operand.vmem [shape: f32[6,256], index: 1, kind: input, shape index: {}]   ;;  %s4138_s5 = inlined_call_operand.vmem [shape: f32[64,256], index: 5, kind: input, shape index: {}]   ;;  %s4139_s2 = inlined_call_operand.vmem [shape: f32[4,64], index: 2, kind: input, shape index: {}]   ;;  %s4140_s6 = inlined_call_operand.vmem [shape: f32[128,192], index: 6, kind: input, shape index: {}]   ;;  %s4141_s3 = inlined_call_operand.vmem [shape: f32[7,128], index: 3, kind: input, shape index: {}]   ;;  %s4142_s7 = inlined_call_operand.vmem [shape: f32[128,128], index: 7, kind: input, shape index: {}]   ;;  %s4143_s8 = inlined_call_operand.vmem [shape: f32[128,64], index: 8, kind: input, shape index: {}]   ;;  %s4144_s10 = inlined_call_operand.vmem [shape: f32[64,64], index: 10, kind: input, shape index: {}]   ;;  %s4145_s9 = inlined_call_operand.vmem [shape: f32[64,64], index: 9, kind: input, shape index: {}]   ;;  %s4146_s11 = inlined_call_operand.vmem [shape: f32[64,256], index: 11, kind: input, shape index: {}]   ;;  %s4147_s12 = inlined_call_operand.vmem [shape: f32[8,256], index: 12, kind: output, shape index: {}]  }
   0x1   :  { %v98_v0 = vld [vmem:[%s4135_s4 + $0xf8] sm:$0xff]  ;;  %v97_v2 = vld [vmem:[%s4135_s4 + $0xf0] sm:$0xff]  ;;  %v96_v5 = vld [vmem:[%s4135_s4 + $0xe8] sm:$0xff]  ;;  %264 = vmatprep.mubr.f32.mxu1 %v2920_v55 }
   0x2   :  { %v82_v1 = vld [vmem:[%s4135_s4 + $0x78] sm:$0xff]  ;;  %2397 = vmatprep.subr.mxu0 %v98_v0  ;;  %v81_v4 = vld [vmem:[%s4135_s4 + $0x70] sm:$0xff]  ;;  %v80_v6 = vld [vmem:[%s4135_s4 + $0x68] sm:$0xff]  ;;  %v3011_v8 = vshrl.u32 %v47_v3, 7 }
   0x3   :  { %2398 = vmatpush3.msra.mxu0 %v82_v1  ;;  %v95_v7 = vld [vmem:[%s4135_s4 + $0xe0] sm:$0xff]  ;;  %v94_v10 = vld [vmem:[%s4135_s4 + $0xd8] sm:$0xff]  ;;  %v93_v12 = vld [vmem:[%s4135_s4 + $0xd0] sm:$0xff] }
   0x4   :  { %2399 = vmatprep.subr.mxu0 %v97_v2  ;;  %v79_v9 = vld [vmem:[%s4135_s4 + $0x60] sm:$0xff]  ;;  %v78_v11 = vld [vmem:[%s4135_s4 + $0x58] sm:$0xff]  ;;  %v3026_v13 = vsub.s32 0, %v3011_v8  ;;  %v3029_v14 = vsub.s32 1, %v3011_v8  ;;  %v77_v15 = vld [vmem:[%s4135_s4 + $0x50] sm:$0xff]  ;;  %vm288_vm1 = vcmp.ge.s32.totalorder %v3011_v8, 3 }
   0x5   :  { %2400 = vmatpush3.msra.mxu0 %v81_v4  ;;  %v92_v16 = vld [vmem:[%s4135_s4 + $0xc8] sm:$0xff]  ;;  %v91_v20 = vld [vmem:[%s4135_s4 + $0xc0] sm:$0xff]  ;;  %v90_v24 = vld [vmem:[%s4135_s4 + $0xb8] sm:$0xff]  ;;  %vm300_vm2 = vcmp.ge.s32.totalorder %v3011_v8, 2  ;;  %vm312_vm3 = vcmp.ge.s32.totalorder %v3011_v8, 1 }
   0x6   :  { %2401 = vmatprep.subr.mxu0 %v96_v5  ;;  %v76_v17 = vld [vmem:[%s4135_s4 + $0x48] sm:$0xff]  ;;  %v75_v23 = vld [vmem:[%s4135_s4 + $0x40] sm:$0xff]  ;;  %v74_v26 = vld [vmem:[%s4135_s4 + $0x38] sm:$0xff] }
   0x7   :  { %2402 = vmatpush3.msra.mxu0 %v80_v6  ;;  %v42_v18 = vld [vmem:[%s4136_s0 + $0x8] sm:$0xff]  ;;  %v89_v27 = vld [vmem:[%s4135_s4 + $0xb0] sm:$0xff]  ;;  %v43_v31 = vld [vmem:[%s4137_s1] sm:$0x3f] }
   0x8   :  { %2403 = vmatprep.subr.mxu0 %v95_v7  ;;  %v44_v19 = vld [vmem:[%s4137_s1 + $0x8] sm:$0x3f]  ;;  %v73_v29 = vld [vmem:[%s4135_s4 + $0x30] sm:$0xff]  ;;  %v87_v33 = vld [vmem:[%s4135_s4 + $0xa0] sm:$0xff]  ;;  %v50_v35 = vrot.slane %v43_v31, %v3026_v13  ;;  %v60_v42 = vrot.slane %v43_v31, %v3029_v14 }
   0x9   :  { %2404 = vmatpush3.msra.mxu0 %v79_v9  ;;  %v54_v21 = vrot.slane %v44_v19, %v3026_v13  ;;  %v64_v22 = vrot.slane %v44_v19, %v3029_v14  ;;  %v88_v30 = vld [vmem:[%s4135_s4 + $0xa8] sm:$0xff]  ;;  %v71_v34 = vld [vmem:[%s4135_s4 + $0x20] sm:$0xff]  ;;  %v86_v36 = vld [vmem:[%s4135_s4 + $0x98] sm:$0xff] }
   0xa   :  { %2405 = vmatprep.subr.mxu0 %v94_v10  ;;  %v72_v32 = vld [vmem:[%s4135_s4 + $0x28] sm:$0xff]  ;;  %v41_v37 = vld [vmem:[%s4136_s0] sm:$0xff]  ;;  %v70_v38 = vld [vmem:[%s4135_s4 + $0x18] sm:$0xff] }
   0xb   :  { %2406 = vmatpush3.msra.mxu0 %v78_v11  ;;  %v56_v25 = vmul.f32 %v54_v21, %v42_v18  ;;  %v85_v39 = vld [vmem:[%s4135_s4 + $0x90] sm:$0xff]  ;;  %v55_v41 = vmul.f32 %v50_v35, %v41_v37  ;;  %v84_v43 = vld [vmem:[%s4135_s4 + $0x88] sm:$0xff]  ;;  %v83_v45 = vld [vmem:[%s4135_s4 + $0x80] sm:$0xff] }
   0xc   :  { %2407 = vmatprep.subr.mxu0 %v93_v12  ;;  %v69_v40 = vld [vmem:[%s4135_s4 + $0x10] sm:$0xff]  ;;  %v68_v44 = vld [vmem:[%s4135_s4 + $0x8] sm:$0xff]  ;;  %v67_v46 = vld [vmem:[%s4135_s4] sm:$0xff] }
   0xd   :  { %2408 = vmatpush3.msra.mxu0 %v77_v15  ;;  %v66_v28 = vadd.f32 %v64_v22, %v56_v25  ;;  %v65_v47 = vadd.f32 %v60_v42, %v55_v41  ;;  %v195_v48 = vld [vmem:[%s4138_s5 + $0x78] sm:$0xff]  ;;  %v194_v49 = vld [vmem:[%s4138_s5 + $0x70] sm:$0xff]  ;;  %v193_v50 = vld [vmem:[%s4138_s5 + $0x68] sm:$0xff] }
   0xe   :  { %2409 = vmatprep.subr.mxu0 %v92_v16  ;;  %216 = vmatprep.subr.mxu1 %v195_v48  ;;  %v192_v51 = vld [vmem:[%s4138_s5 + $0x60] sm:$0xff]  ;;  %v191_v52 = vld [vmem:[%s4138_s5 + $0x58] sm:$0xff]  ;;  %v190_v53 = vld [vmem:[%s4138_s5 + $0x50] sm:$0xff]  ;;  %v3272_v48 = vsub.s32 4, %v3011_v8 }
   0xf   :  { %2410 = vmatpush3.msra.mxu0 %v76_v17  ;;  %163 = vmatprep.mubr.f32.mxu0 %v66_v28  ;;  %v189_v54 = vld [vmem:[%s4138_s5 + $0x48] sm:$0xff]  ;;  %v188_v56 = vld [vmem:[%s4138_s5 + $0x40] sm:$0xff]  ;;  %v187_v57 = vld [vmem:[%s4138_s5 + $0x38] sm:$0xff] }
  0x10   :  { %2411 = vmatprep.subr.mxu0 %v91_v20  ;;  %217 = vmatpush1.msra.mxu1 %v194_v49  ;;  %v186_v58 = vld [vmem:[%s4138_s5 + $0x30] sm:$0xff]  ;;  %v185_v59 = vld [vmem:[%s4138_s5 + $0x28] sm:$0xff]  ;;  %v184_v60 = vld [vmem:[%s4138_s5 + $0x20] sm:$0xff] }
  0x11   :  { %2412 = vmatpush3.msra.mxu0 %v75_v23  ;;  %218 = vmatprep.subr.mxu1 %v193_v50  ;;  %v183_v61 = vld [vmem:[%s4138_s5 + $0x18] sm:$0xff]  ;;  %v182_v62 = vld [vmem:[%s4138_s5 + $0x10] sm:$0xff]  ;;  %v181_v63 = vld [vmem:[%s4138_s5 + $0x8] sm:$0xff] }
  0x12   :  { %2413 = vmatprep.subr.mxu0 %v90_v24  ;;  %219 = vmatpush1.msra.mxu1 %v192_v51  ;;  %v180_v0 = vld [vmem:[%s4138_s5] sm:$0xff]  ;;  %v357_v12 = vld [vmem:[%s4140_s6 + $0xf8] sm:$0xff]  ;;  %v356_v15 = vld [vmem:[%s4140_s6 + $0xf0] sm:$0xff] }
  0x13   :  { %2414 = vmatpush3.msra.mxu0 %v74_v26  ;;  %220 = vmatprep.subr.mxu1 %v191_v52  ;;  %v45_v1 = vld [vmem:[%s4139_s2] sm:$0xf]  ;;  %v355_v16 = vld [vmem:[%s4140_s6 + $0xe8] sm:$0xff]  ;;  %v353_v18 = vld [vmem:[%s4140_s6 + $0xd8] sm:$0xff] }
  0x14   :  { %2415 = vmatprep.subr.mxu0 %v89_v27  ;;  %221 = vmatpush1.msra.mxu1 %v190_v53  ;;  %v172_v4 = vrot.slane %v45_v1, %v3026_v13  ;;  %v177_v7 = vrot.slane %v45_v1, %v3029_v14  ;;  %v354_v17 = vld [vmem:[%s4140_s6 + $0xe0] sm:$0xff]  ;;  %v352_v19 = vld [vmem:[%s4140_s6 + $0xd0] sm:$0xff]  ;;  %v351_v20 = vld [vmem:[%s4140_s6 + $0xc8] sm:$0xff]  ;;  %v3280_v53 = vsub.s32 2, %v3011_v8 }
  0x15   :  { %2416 = vmatpush3.msra.mxu0 %v73_v29  ;;  %222 = vmatprep.subr.mxu1 %v189_v54  ;;  %v350_v21 = vld [vmem:[%s4140_s6 + $0xc0] sm:$0xff]  ;;  %v349_v22 = vld [vmem:[%s4140_s6 + $0xb8] sm:$0xff]  ;;  %v348_v23 = vld [vmem:[%s4140_s6 + $0xb0] sm:$0xff] }
  0x16   :  { %2417 = vmatprep.subr.mxu0 %v88_v30  ;;  %223 = vmatpush1.msra.mxu1 %v188_v56  ;;  %v347_v24 = vld [vmem:[%s4140_s6 + $0xa8] sm:$0xff]  ;;  %v346_v25 = vld [vmem:[%s4140_s6 + $0xa0] sm:$0xff]  ;;  %v345_v26 = vld [vmem:[%s4140_s6 + $0x98] sm:$0xff] }
  0x17   :  { %2418 = vmatpush3.msra.mxu0 %v72_v32  ;;  %224 = vmatprep.subr.mxu1 %v187_v57  ;;  %v344_v27 = vld [vmem:[%s4140_s6 + $0x90] sm:$0xff]  ;;  %v343_v28 = vld [vmem:[%s4140_s6 + $0x88] sm:$0xff]  ;;  %v342_v29 = vld [vmem:[%s4140_s6 + $0x80] sm:$0xff] }
  0x18   :  { %2419 = vmatprep.subr.mxu0 %v87_v33  ;;  %225 = vmatpush1.msra.mxu1 %v186_v58  ;;  %v341_v30 = vld [vmem:[%s4140_s6 + $0x78] sm:$0xff]  ;;  %v340_v31 = vld [vmem:[%s4140_s6 + $0x70] sm:$0xff]  ;;  %v339_v32 = vld [vmem:[%s4140_s6 + $0x68] sm:$0xff] }
  0x19   :  { %2420 = vmatpush3.msra.mxu0 %v71_v34  ;;  %226 = vmatprep.subr.mxu1 %v185_v59  ;;  %v338_v33 = vld [vmem:[%s4140_s6 + $0x60] sm:$0xff]  ;;  %v337_v34 = vld [vmem:[%s4140_s6 + $0x58] sm:$0xff]  ;;  %v336_v35 = vld [vmem:[%s4140_s6 + $0x50] sm:$0xff] }
  0x1a   :  { %2421 = vmatprep.subr.mxu0 %v86_v36  ;;  %227 = vmatpush1.msra.mxu1 %v184_v60  ;;  %v335_v36 = vld [vmem:[%s4140_s6 + $0x48] sm:$0xff]  ;;  %v334_v37 = vld [vmem:[%s4140_s6 + $0x40] sm:$0xff]  ;;  %v329_v42 = vld [vmem:[%s4140_s6 + $0x18] sm:$0xff] }
  0x1b   :  { %2422 = vmatpush3.msra.mxu0 %v70_v38  ;;  %228 = vmatprep.subr.mxu1 %v183_v61  ;;  %v333_v38 = vld [vmem:[%s4140_s6 + $0x38] sm:$0xff]  ;;  %v330_v41 = vld [vmem:[%s4140_s6 + $0x20] sm:$0xff] }
  0x1c   :  { %2423 = vmatprep.subr.mxu0 %v85_v39  ;;  %229 = vmatpush1.msra.mxu1 %v182_v62  ;;  %v332_v39 = vld [vmem:[%s4140_s6 + $0x30] sm:$0xff] }
  0x1d   :  { %2424 = vmatpush3.msra.mxu0 %v69_v40  ;;  %230 = vmatprep.subr.mxu1 %v181_v63  ;;  %v331_v40 = vld [vmem:[%s4140_s6 + $0x28] sm:$0xff] }
  0x1e   :  { %2425 = vmatprep.subr.mxu0 %v84_v43  ;;  %231 = vmatpush1.msra.mxu1 %v180_v0  ;;  %v328_v43 = vld [vmem:[%s4140_s6 + $0x10] sm:$0xff] }
  0x1f   :  { %2426 = vmatpush3.msra.mxu0 %v68_v44  ;;  %358 = vmatprep.subr.mxu1 %v357_v12  ;;  %v327_v44 = vld [vmem:[%s4140_s6 + $0x8] sm:$0xff] }
  0x20   :  { %2427 = vmatprep.subr.mxu0 %v83_v45  ;;  %v326_v45 = vld [vmem:[%s4140_s6] sm:$0xff]  ;;  %s2921_s6 = smov 96  }
  0x21   :  { %2428 = vmatpush3.msra.mxu0 %v67_v46  ;;  %v3266_v46 = vsub.s32 3, %v3011_v8 }
  0x22   :  { %164 = vmatmul.mubr.f32.vlgmr.msra.gmra.mxu0 %v65_v47  ;;  %v46_v47 = vld [vmem:[%s4141_s3] sm:$0x7f] }
  0x23   :  { %v276_v49 = vrot.slane %v46_v47, %v3266_v46  ;;  %v281_v50 = vrot.slane %v46_v47, %v3272_v48  ;;  %v293_v52 = vrot.slane %v46_v47, %v3026_v13  ;;  %v305_v59 = vrot.slane %v46_v47, %v3029_v14 }
  0x24   :  { %v317_v0 = vrot.slane %v46_v47, %v3280_v53 }
  0xe2   :  { %v2429_v2 = vpop.f32.mrf.mxu0 }
  0xe4   :  { %v2430_v5 = vpop.f32.mrf.mxu0 }
  0xe5   :  { %v2431_v6 = vadd.f32 %v2430_v5, %v2429_v2 }
  0xe7   :  { %v173_v9 = vmul.f32 %v2431_v6, %v172_v4 }
  0xe9   :  { %v178_v10 = vadd.f32 %v177_v7, %v173_v9 }
  0xeb   :  { %2872 = vtanh.f32 %v178_v10 }
  0xf8   :  { %v3164_v11 = vpop.eup %2872 }
  0xf9   :  { %2251 = vmatmul.mubr.msk.f32.vlgmr.msra.gmra.mxu1 %vm196_vm0, %v3164_v11 }
  0xfa   :  { %422 = vmatprep.mubr.f32.mxu1 %v2920_v55  ;;  %359 = vmatpush1.msra.mxu1 %v356_v15 }
  0xfb   :  { %360 = vmatprep.subr.mxu1 %v355_v16  ;;  %v3289_v16 = vand.u32 127, %v47_v3 }
  0xfc   :  { %361 = vmatpush1.msra.mxu1 %v354_v17  ;;  %v461_v17 = vshra.s32 %v3011_v8, 4 }
  0xfd   :  { %362 = vmatprep.subr.mxu1 %v353_v18 }
  0xfe   :  { %363 = vmatpush1.msra.mxu1 %v352_v19  ;;  %vm477_vm4 = vcmp.eq.s32.totalorder %v461_v17, %v3289_v16  ;;  %v3303_v19 = vsub.s32 5, %v3011_v8 }
  0xff   :  { %364 = vmatprep.subr.mxu1 %v351_v20  ;;  %v3296_v18 = vsel %vm477_vm4, 1.0, %v2920_v55 }
 0x100   :  { %365 = vmatpush1.msra.mxu1 %v350_v21  ;;  %2594 = vmatprep.mubr.msk.f32.mxu0 %vm607_vm5, %v3296_v18  ;;  %v432_v3 = vrot.slane %v46_v47, %v3303_v19  ;;  %v3345_v47 = vadd.s32 56, %v3011_v8 }
 0x101   :  { %366 = vmatprep.subr.mxu1 %v349_v22 }
 0x102   :  { %367 = vmatpush1.msra.mxu1 %v348_v23 }
 0x103   :  { %368 = vmatprep.subr.mxu1 %v347_v24 }
 0x104   :  { %369 = vmatpush1.msra.mxu1 %v346_v25 }
 0x105   :  { %370 = vmatprep.subr.mxu1 %v345_v26 }
 0x106   :  { %371 = vmatpush1.msra.mxu1 %v344_v27 }
 0x107   :  { %372 = vmatprep.subr.mxu1 %v343_v28 }
 0x108   :  { %373 = vmatpush1.msra.mxu1 %v342_v29  ;;  %v3309_v29 = vadd.s32 8, %v3011_v8 }
 0x109   :  { %374 = vmatprep.subr.mxu1 %v341_v30  ;;  %v3312_v30 = vadd.s32 16, %v3011_v8 }
 0x10a   :  { %375 = vmatpush1.msra.mxu1 %v340_v31  ;;  %v462_v31 = vshra.s32 %v3309_v29, 4 }
 0x10b   :  { %376 = vmatprep.subr.mxu1 %v339_v32  ;;  %v3316_v32 = vadd.s32 24, %v3011_v8 }
 0x10c   :  { %377 = vmatpush1.msra.mxu1 %v338_v33  ;;  %v3319_v33 = vadd.s32 32, %v3011_v8  ;;  %vm478_vm6 = vcmp.eq.s32.totalorder %v462_v31, %v3289_v16 }
 0x10d   :  { %378 = vmatprep.subr.mxu1 %v337_v34  ;;  %v463_v34 = vshra.s32 %v3312_v30, 4 }
 0x10e   :  { %379 = vmatpush1.msra.mxu1 %v336_v35 }
 0x10f   :  { %380 = vmatprep.subr.mxu1 %v335_v36  ;;  %vm479_vm7 = vcmp.eq.s32.totalorder %v463_v34, %v3289_v16 }
 0x110   :  { %381 = vmatpush1.msra.mxu1 %v334_v37 }
 0x111   :  { %382 = vmatprep.subr.mxu1 %v333_v38  ;;  %v464_v38 = vshra.s32 %v3316_v32, 4 }
 0x112   :  { %383 = vmatpush1.msra.mxu1 %v332_v39  ;;  %v3327_v39 = vadd.s32 40, %v3011_v8 }
 0x113   :  { %384 = vmatprep.subr.mxu1 %v331_v40  ;;  %v465_v40 = vshra.s32 %v3319_v33, 4  ;;  %vm480_vm8 = vcmp.eq.s32.totalorder %v464_v38, %v3289_v16 }
 0x114   :  { %385 = vmatpush1.msra.mxu1 %v330_v41  ;;  %v3331_v41 = vadd.s32 48, %v3011_v8 }
 0x115   :  { %386 = vmatprep.subr.mxu1 %v329_v42  ;;  %vm481_vm9 = vcmp.eq.s32.totalorder %v465_v40, %v3289_v16 }
 0x116   :  { %387 = vmatpush1.msra.mxu1 %v328_v43  ;;  %v3337_v43 = vsel %vm478_vm6, 1.0, %v2920_v55 }
 0x117   :  { %388 = vmatprep.subr.mxu1 %v327_v44 }
 0x118   :  { %389 = vmatpush1.msra.mxu1 %v326_v45  ;;  %v466_v45 = vshra.s32 %v3327_v39, 4 }
 0x11a   :  { %vm482_vm10 = vcmp.eq.s32.totalorder %v466_v45, %v3289_v16 }
 0x1b9   :  { %v266_v51 = vpop.f32.mrf.mxu1 }
 0x1ba   :  { %v277_v54 = vmul.f32 %v276_v49, %v266_v51  ;;  %v284_v56 = vrot.slane %v266_v51, 5  ;;  %v296_v57 = vrot.slane %v266_v51, 6  ;;  %v308_v58 = vrot.slane %v266_v51, 7 }
 0x1bb   :  { %v3306_v20 = vpop.f32.mrf.mxu1  ;;  %v3348_v49 = vsel %vm479_vm7, 1.0, %v2920_v55  ;;  %v3353_v51 = vadd.s32 64, %v3011_v8 }
 0x1bc   :  { %v282_v60 = vadd.f32 %v281_v50, %v277_v54  ;;  %v289_v61 = vsel %vm288_vm1, %v284_v56, 0.0  ;;  %v301_v62 = vsel %vm300_vm2, %v296_v57, 0.0  ;;  %v313_v13 = vsel %vm312_vm3, %v308_v58, 0.0 }
 0x1bd   :  { %v294_v63 = vmul.f32 %v293_v52, %v289_v61  ;;  %v306_v2 = vmul.f32 %v305_v59, %v301_v62  ;;  %v318_v5 = vmul.f32 %v317_v0, %v313_v13  ;;  %v467_v50 = vshra.s32 %v3331_v41, 4 }
 0x1be   :  { %v3358_v52 = vsel %vm480_vm8, 1.0, %v2920_v55  ;;  %v3363_v54 = vsel %vm481_vm9, 1.0, %v2920_v55  ;;  %v468_v56 = vshra.s32 %v3345_v47, 4  ;;  %v3368_v57 = vadd.s32 72, %v3011_v8 }
 0x1bf   :  { %v295_v1 = vadd.f32 %v294_v63, %v282_v60  ;;  %vm483_vm11 = vcmp.eq.s32.totalorder %v467_v50, %v3289_v16  ;;  %v469_v58 = vshra.s32 %v3353_v51, 4  ;;  %v3373_v59 = vadd.s32 80, %v3011_v8 }
 0x1c0   :  { %v3384_v60 = vsel %vm482_vm10, 1.0, %v2920_v55  ;;  %v3387_v61 = vsel %vm483_vm11, 1.0, %v2920_v55  ;;  %vm484_vm12 = vcmp.eq.s32.totalorder %v468_v56, %v3289_v16  ;;  %v470_v62 = vshra.s32 %v3368_v57, 4 }
 0x1c1   :  { %v307_v4 = vadd.f32 %v306_v2, %v295_v1  ;;  %v3392_v63 = vadd.s32 88, %v3011_v8  ;;  %vm485_vm13 = vcmp.eq.s32.totalorder %v469_v58, %v3289_v16  ;;  %v471_v0 = vshra.s32 %v3373_v59, 4 }
 0x1c2   :  { %v3397_v13 = vadd.s32 96, %v3011_v8  ;;  %v3408_v1 = vsel %vm484_vm12, 1.0, %v2920_v55  ;;  %v3411_v2 = vsel %vm485_vm13, 1.0, %v2920_v55  ;;  %vm486_vm14 = vcmp.eq.s32.totalorder %v470_v62, %v3289_v16 }
 0x1c3   :  { %v319_v6 = vadd.f32 %v318_v5, %v307_v4  ;;  %v472_v4 = vshra.s32 %v3392_v63, 4  ;;  %v3416_v5 = vadd.s32 104, %v3011_v8  ;;  %vm487_vm15 = vcmp.eq.s32.totalorder %v471_v0, %v3289_v16 }
 0x1c4   :  { %v526_v58 = vand.u32 15, %v3309_v29 }
 0x1c5   :  { %v320_v7 = vsub.f32 0.0, %v319_v6  ;;  %vm488_vm1 = vcmp.eq.s32.totalorder %v472_v4, %v3289_v16 }
 0x1c7   :  { %v321_v9 = vmul.f32 1.442695, %v320_v7  ;;  %v3421_v7 = vadd.s32 112, %v3011_v8 }
 0x1c9   :  { %2874 = vpow2.f32 %v321_v9  ;;  %v2261_v9 = vsel %vm486_vm14, 1.0, %v2920_v55  ;;  %vm1105_vm14 = vcmask 261120  }
 0x1d6   :  { %v2875_v10 = vpop.eup %2874 }
 0x1d7   :  { %v323_v12 = vadd.f32 1.0, %v2875_v10  ;;  %v2262_v10 = vsel %vm487_vm15, 1.0, %v2920_v55 }
 0x1d9   :  { %2876 = vrcp.f32 %v323_v12  ;;  %v474_v12 = vshra.s32 %v3416_v5, 4 }
 0x1db   :  { %vm490_vm3 = vcmp.eq.s32.totalorder %v474_v12, %v3289_v16 }
 0x1e6   :  { %v2877_v14 = vpop.eup %2876 }
 0x1e7   :  { %v3285_v15 = vmul.f32 %v2877_v14, %v319_v6  ;;  %v473_v6 = vshra.s32 %v3397_v13, 4  ;;  %v3436_v14 = vadd.s32 120, %v3011_v8 }
 0x1e9   :  { %423 = vmatmul.mubr.f32.vlgmr.msra.gmra.mxu1 %v3285_v15  ;;  %vm489_vm2 = vcmp.eq.s32.totalorder %v473_v6, %v3289_v16 }
 0x1ea   :  { %2620 = vmatprep.mubr.msk.f32.mxu1 %vm607_vm5, %v3296_v18 }
 0x2a9   :  { %v424_v21 = vpop.f32.mrf.mxu1 }
 0x2aa   :  { %v433_v22 = vadd.f32 %v432_v3, %v424_v21  ;;  %v475_v3 = vshra.s32 %v3421_v7, 4  ;;  %v2263_v21 = vsel %vm488_vm1, 1.0, %v2920_v55 }
 0x2ab   :  { %v426_v23 = vpop.f32.mrf.mxu1 }
 0x2ac   :  { %v435_v24 = vand.u32 2147483647, %v433_v22  ;;  %1300 = vrot.lane.b32.xlu0 %v426_v23, %s2921_s6  ;;  %v434_v36 = vmax.f32 %v433_v22, 0.0  ;;  %v2264_v22 = vsel %vm489_vm2, 1.0, %v2920_v55  ;;  %vm491_vm4 = vcmp.eq.s32.totalorder %v475_v3, %v3289_v16 }
 0x2ae   :  { %v436_v25 = vsub.f32 0.0, %v435_v24  ;;  %v2265_v24 = vsel %vm490_vm3, 1.0, %v2920_v55 }
 0x2b0   :  { %v437_v26 = vmul.f32 1.442695, %v436_v25  ;;  %v2266_v25 = vsel %vm491_vm4, 1.0, %v2920_v55 }
 0x2b2   :  { %2878 = vpow2.f32 %v437_v26 }
 0x2bf   :  { %v2879_v27 = vpop.eup %2878 }
 0x2c0   :  { %v439_v28 = vadd.f32 1.0, %v2879_v27 }
 0x2c2   :  { %2880 = vlog2.f32 %v439_v28 }
 0x2cf   :  { %v2881_v35 = vpop.eup %2880 }
 0x2d0   :  { %v441_v37 = vmul.f32 0.6931472, %v2881_v35  ;;  %v2922_v35 = vmov 1.0  }
 0x2d2   :  { %v442_v42 = vadd.f32 %v441_v37, %v434_v36 }
 0x2d4   :  { %2592 = vmatprep.subr.mxu0 %v442_v42  ;;  %v443_v44 = vmul.f32 %v442_v42, %v3285_v15 }
 0x2d5   :  { %2593 = vmatpush3.msra.mxu0 %v442_v42 }
 0x2d6   :  { %2595 = vmatmul.mubr.msk.f32.vlgmr.msra.gmra.mxu0 %vm607_vm5, %v3337_v43  ;;  %2618 = vmatprep.subr.mxu1 %v443_v44 }
 0x2d7   :  { %2644 = vmatprep.subr.mxu0 %v426_v23  ;;  %2619 = vmatpush3.msra.mxu1 %v443_v44 }
 0x2d8   :  { %2645 = vmatpush3.msra.mxu0 %v426_v23  ;;  %2597 = vmatprep.mubr.msk.f32.mxu0 %vm607_vm5, %v3348_v49  ;;  %v476_v23 = vshra.s32 %v3436_v14, 4 }
 0x2d9   :  { %2621 = vmatmul.mubr.msk.f32.vlgmr.msra.gmra.mxu1 %vm607_vm5, %v3337_v43 }
 0x2da   :  { %2598 = vmatmul.mubr.msk.f32.gmra.mxu0 %vm607_vm5, %v3358_v52  ;;  %2623 = vmatprep.mubr.msk.f32.mxu1 %vm607_vm5, %v3348_v49  ;;  %vm492_vm6 = vcmp.eq.s32.totalorder %v476_v23, %v3289_v16 }
 0x2db   :  { %2600 = vmatprep.mubr.msk.f32.mxu0 %vm607_vm5, %v3363_v54  ;;  %v2267_v26 = vsel %vm492_vm6, 1.0, %v2920_v55 }
 0x2dd   :  { %2624 = vmatmul.mubr.msk.f32.gmra.mxu1 %vm607_vm5, %v3358_v52 }
 0x2de   :  { %2601 = vmatmul.mubr.msk.f32.gmra.mxu0 %vm607_vm5, %v3384_v60  ;;  %2626 = vmatprep.mubr.msk.f32.mxu1 %vm607_vm5, %v3363_v54 }
 0x2df   :  { %2603 = vmatprep.mubr.msk.f32.mxu0 %vm607_vm5, %v3387_v61 }
 0x2e1   :  { %2627 = vmatmul.mubr.msk.f32.gmra.mxu1 %vm607_vm5, %v3384_v60 }
 0x2e2   :  { %2604 = vmatmul.mubr.msk.f32.gmra.mxu0 %vm607_vm5, %v3408_v1  ;;  %2629 = vmatprep.mubr.msk.f32.mxu1 %vm607_vm5, %v3387_v61 }
 0x2e3   :  { %2606 = vmatprep.mubr.msk.f32.mxu0 %vm607_vm5, %v3411_v2 }
 0x2e5   :  { %2630 = vmatmul.mubr.msk.f32.gmra.mxu1 %vm607_vm5, %v3408_v1 }
 0x2e6   :  { %2607 = vmatmul.mubr.msk.f32.gmra.mxu0 %vm607_vm5, %v2261_v9  ;;  %2632 = vmatprep.mubr.msk.f32.mxu1 %vm607_vm5, %v3411_v2 }
 0x2e7   :  { %2609 = vmatprep.mubr.msk.f32.mxu0 %vm607_vm5, %v2262_v10 }
 0x2e9   :  { %2633 = vmatmul.mubr.msk.f32.gmra.mxu1 %vm607_vm5, %v2261_v9 }
 0x2ea   :  { %2610 = vmatmul.mubr.msk.f32.gmra.mxu0 %vm607_vm5, %v2263_v21  ;;  %2635 = vmatprep.mubr.msk.f32.mxu1 %vm607_vm5, %v2262_v10 }
 0x2eb   :  { %2612 = vmatprep.mubr.msk.f32.mxu0 %vm607_vm5, %v2264_v22 }
 0x2ed   :  { %2636 = vmatmul.mubr.msk.f32.gmra.mxu1 %vm607_vm5, %v2263_v21 }
 0x2ee   :  { %2613 = vmatmul.mubr.msk.f32.gmra.mxu0 %vm607_vm5, %v2265_v24  ;;  %2638 = vmatprep.mubr.msk.f32.mxu1 %vm607_vm5, %v2264_v22 }
 0x2ef   :  { %2615 = vmatprep.mubr.msk.f32.mxu0 %vm607_vm5, %v2266_v25 }
 0x2f1   :  { %2639 = vmatmul.mubr.msk.f32.gmra.mxu1 %vm607_vm5, %v2265_v24 }
 0x2f2   :  { %2616 = vmatmul.mubr.msk.f32.gmra.mxu0 %vm607_vm5, %v2267_v26  ;;  %2641 = vmatprep.mubr.msk.f32.mxu1 %vm607_vm5, %v2266_v25 }
 0x2f3   :  { %2646 = vmatprep.mubr.msk.f32.mxu0 %vm607_vm5, %v3296_v18 }
 0x2f5   :  { %2642 = vmatmul.mubr.msk.f32.gmra.mxu1 %vm607_vm5, %v2267_v26 }
 0x2f6   :  { %2647 = vmatmul.mubr.msk.f32.vlgmr.msra.gmra.mxu0 %vm607_vm5, %v3337_v43 }
 0x2f7   :  { %2649 = vmatprep.mubr.msk.f32.mxu0 %vm607_vm5, %v3348_v49 }
 0x2fa   :  { %2650 = vmatmul.mubr.msk.f32.gmra.mxu0 %vm607_vm5, %v3358_v52 }
 0x2fb   :  { %2652 = vmatprep.mubr.msk.f32.mxu0 %vm607_vm5, %v3363_v54 }
 0x2fe   :  { %2653 = vmatmul.mubr.msk.f32.gmra.mxu0 %vm607_vm5, %v3384_v60 }
 0x2ff   :  { %2655 = vmatprep.mubr.msk.f32.mxu0 %vm607_vm5, %v3387_v61 }
 0x302   :  { %2656 = vmatmul.mubr.msk.f32.gmra.mxu0 %vm607_vm5, %v3408_v1 }
 0x303   :  { %2658 = vmatprep.mubr.msk.f32.mxu0 %vm607_vm5, %v3411_v2 }
 0x306   :  { %2659 = vmatmul.mubr.msk.f32.gmra.mxu0 %vm607_vm5, %v2261_v9 }
 0x307   :  { %2661 = vmatprep.mubr.msk.f32.mxu0 %vm607_vm5, %v2262_v10 }
 0x30a   :  { %2662 = vmatmul.mubr.msk.f32.gmra.mxu0 %vm607_vm5, %v2263_v21 }
 0x30b   :  { %2664 = vmatprep.mubr.msk.f32.mxu0 %vm607_vm5, %v2264_v22 }
 0x30e   :  { %2665 = vmatmul.mubr.msk.f32.gmra.mxu0 %vm607_vm5, %v2265_v24 }
 0x30f   :  { %2667 = vmatprep.mubr.msk.f32.mxu0 %vm607_vm5, %v2266_v25 }
 0x312   :  { %2668 = vmatmul.mubr.msk.f32.gmra.mxu0 %vm607_vm5, %v2267_v26 }
 0x313   :  { %2704 = vmatprep.mubr.msk.f32.mxu0 %vm607_vm5, %v3296_v18  ;;  %v590_v18 = vshra.s32 %v3289_v16, 6 }
 0x315   :  { %vm3516_vm7 = vcmp.eq.s32.totalorder %v464_v38, %v590_v18  ;;  %vm3530_vm8 = vcmp.eq.s32.totalorder %v463_v34, %v590_v18  ;;  %vm3542_vm9 = vcmp.eq.s32.totalorder %v462_v31, %v590_v18  ;;  %vm3556_vm10 = vcmp.eq.s32.totalorder %v461_v17, %v590_v18 }
 0x316   :  { %2670 = vmatprep.subr.msk.mxu1 %vm3516_vm7, %v2922_v35  ;;  %v537_v34 = vand.u32 15, %v3397_v13  ;;  %v539_v13 = vand.u32 15, %v3421_v7 }
 0x317   :  { %2671 = vmatpush3.msk.msra.mxu1 %vm3516_vm7, %v2922_v35 }
 0x318   :  { %2672 = vmatprep.subr.msk.mxu1 %vm3530_vm8, %v2922_v35 }
 0x319   :  { %2673 = vmatpush3.msk.msra.mxu1 %vm3530_vm8, %v2922_v35 }
 0x31a   :  { %2674 = vmatprep.subr.msk.mxu1 %vm3542_vm9, %v2922_v35 }
 0x31b   :  { %2675 = vmatpush3.msk.msra.mxu1 %vm3542_vm9, %v2922_v35 }
 0x31c   :  { %2676 = vmatprep.subr.msk.mxu1 %vm3556_vm10, %v2922_v35 }
 0x31d   :  { %2677 = vmatpush3.msk.msra.mxu1 %vm3556_vm10, %v2922_v35 }
 0x31e   :  { %v1301_v27 = vpop.permute.xlu0 %1300  ;;  %2728 = vmatprep.subr.msk.mxu1 %vm3516_vm7, %v2922_v35 }
 0x31f   :  { %2702 = vmatprep.subr.mxu0 %v1301_v27 }
 0x320   :  { %2703 = vmatpush3.msra.mxu0 %v1301_v27 }
 0x321   :  { %2705 = vmatmul.mubr.msk.f32.vlgmr.msra.gmra.mxu0 %vm607_vm5, %v3337_v43  ;;  %2760 = vmatprep.subr.mxu0 %v2920_v55 }
 0x322   :  { %2707 = vmatprep.mubr.msk.f32.mxu0 %vm607_vm5, %v3348_v49 }
 0x325   :  { %2708 = vmatmul.mubr.msk.f32.gmra.mxu0 %vm607_vm5, %v3358_v52 }
 0x326   :  { %2710 = vmatprep.mubr.msk.f32.mxu0 %vm607_vm5, %v3363_v54 }
 0x329   :  { %2711 = vmatmul.mubr.msk.f32.gmra.mxu0 %vm607_vm5, %v3384_v60  ;;  %v3594_v60 = vand.u32 15, %v3289_v16 }
 0x32a   :  { %2713 = vmatprep.mubr.msk.f32.mxu0 %vm607_vm5, %v3387_v61  ;;  %v525_v61 = vand.u32 15, %v3011_v8 }
 0x32c   :  { %vm542_vm11 = vcmp.eq.s32.totalorder %v525_v61, %v3594_v60  ;;  %v536_v61 = vand.u32 15, %v3392_v63 }
 0x32d   :  { %2714 = vmatmul.mubr.msk.f32.gmra.mxu0 %vm607_vm5, %v3408_v1  ;;  %v528_v1 = vand.u32 15, %v3316_v32  ;;  %v529_v32 = vand.u32 15, %v3319_v33  ;;  %v531_v33 = vand.u32 15, %v3331_v41  ;;  %v534_v41 = vand.u32 15, %v3368_v57 }
 0x32e   :  { %2716 = vmatprep.mubr.msk.f32.mxu0 %vm607_vm5, %v3411_v2  ;;  %v527_v2 = vand.u32 15, %v3312_v30 }
 0x32f   :  { %vm545_vm12 = vcmp.eq.s32.totalorder %v528_v1, %v3594_v60  ;;  %vm546_vm1 = vcmp.eq.s32.totalorder %v529_v32, %v3594_v60  ;;  %vm548_vm3 = vcmp.eq.s32.totalorder %v531_v33, %v3594_v60  ;;  %vm551_vm4 = vcmp.eq.s32.totalorder %v534_v41, %v3594_v60 }
 0x330   :  { %vm544_vm13 = vcmp.eq.s32.totalorder %v527_v2, %v3594_v60  ;;  %v3640_v18 = vsel %vm546_vm1, 1.0, %v2920_v55  ;;  %v3666_v36 = vsel %vm548_vm3, 1.0, %v2920_v55  ;;  %v535_v1 = vand.u32 15, %v3373_v59 }
 0x331   :  { %2717 = vmatmul.mubr.msk.f32.gmra.mxu0 %vm607_vm5, %v2261_v9  ;;  %v3611_v9 = vsel %vm542_vm11, 1.0, %v2920_v55  ;;  %v3623_v23 = vsel %vm544_vm13, 1.0, %v2920_v55  ;;  %v538_v59 = vand.u32 15, %v3416_v5  ;;  %v540_v5 = vand.u32 15, %v3436_v14 }
 0x332   :  { %2719 = vmatprep.mubr.msk.f32.mxu0 %vm607_vm5, %v2262_v10  ;;  %v530_v10 = vand.u32 15, %v3327_v39  ;;  %v532_v39 = vand.u32 15, %v3345_v47  ;;  %vm556_vm11 = vcmp.eq.s32.totalorder %v539_v13, %v3594_v60 }
 0x334   :  { %vm547_vm15 = vcmp.eq.s32.totalorder %v530_v10, %v3594_v60  ;;  %vm549_vm2 = vcmp.eq.s32.totalorder %v532_v39, %v3594_v60 }
 0x335   :  { %2720 = vmatmul.mubr.msk.f32.gmra.mxu0 %vm607_vm5, %v2263_v21  ;;  %v3620_v21 = vsel %vm545_vm12, 1.0, %v2920_v55  ;;  %v3634_v27 = vsel %vm547_vm15, 1.0, %v2920_v55  ;;  %vm2923_vm12 = vmmov 0  }
 0x336   :  { %2722 = vmatprep.mubr.msk.f32.mxu0 %vm607_vm5, %v2264_v22 }
 0x339   :  { %2723 = vmatmul.mubr.msk.f32.gmra.mxu0 %vm607_vm5, %v2265_v24 }
 0x33a   :  { %2725 = vmatprep.mubr.msk.f32.mxu0 %vm607_vm5, %v2266_v25 }
 0x33d   :  { %2726 = vmatmul.mubr.msk.f32.gmra.mxu0 %vm607_vm5, %v2267_v26  ;;  %vm543_vm5 = vcmp.eq.s32.totalorder %v526_v58, %v3594_v60  ;;  %v3660_v58 = vsel %vm549_vm2, 1.0, %v2920_v55 }
 0x33e   :  { %v3608_v29 = vsel %vm543_vm5, 1.0, %v2920_v55  ;;  %vm557_vm5 = vcmp.eq.s32.totalorder %v540_v5, %v3594_v60  ;;  %2792 = vmatprep.mubr.msk.f32.mxu0 %vm2923_vm12, %v2920_v55 }
 0x396   :  { %v2596_v31 = vpop.f32.mrf.mxu0 }
 0x397   :  { %v533_v31 = vand.u32 15, %v3353_v51 }
 0x398   :  { %v722_v38 = vpop.f32.mrf.mxu0 }
 0x399   :  { %vm550_vm6 = vcmp.eq.s32.totalorder %v533_v31, %v3594_v60 }
 0x39a   :  { %v3570_v17 = vpop.f32.mrf.mxu0  ;;  %v3687_v32 = vsel %vm550_vm6, 1.0, %v2920_v55 }
 0x39c   :  { %v3572_v40 = vpop.f32.mrf.mxu0 }
 0x39e   :  { %v3574_v42 = vpop.f32.mrf.mxu0 }
 0x3a0   :  { %v3576_v43 = vpop.f32.mrf.mxu0 }
 0x3a2   :  { %v3578_v44 = vpop.f32.mrf.mxu0 }
 0x3a4   :  { %v3580_v45 = vpop.f32.mrf.mxu0 }
 0x3a6   :  { %v3582_v49 = vpop.f32.mrf.mxu0 }
 0x3a8   :  { %v3584_v50 = vpop.f32.mrf.mxu0 }
 0x3aa   :  { %v3586_v52 = vpop.f32.mrf.mxu0 }
 0x3ac   :  { %v3588_v54 = vpop.f32.mrf.mxu0 }
 0x3ae   :  { %v3590_v56 = vpop.f32.mrf.mxu0 }
 0x3b0   :  { %v3597_v62 = vpop.f32.mrf.mxu0 }
 0x3b2   :  { %v3599_v0 = vpop.f32.mrf.mxu0 }
 0x3b4   :  { %v3605_v4 = vpop.f32.mrf.mxu0 }
 0x3b6   :  { %v2648_v6 = vpop.f32.mrf.mxu0 }
 0x3b7   :  { %v1090_v12 = vmul.f32 %v2648_v6, %v3608_v29  ;;  %v3684_v6 = vsel %vm551_vm4, 1.0, %v2920_v55 }
 0x3b8   :  { %v1010_v30 = vpop.f32.mrf.mxu0 }
 0x3b9   :  { %v1089_v3 = vmul.f32 %v3611_v9, %v1010_v30 }
 0x3ba   :  { %v2651_v22 = vpop.f32.mrf.mxu0 }
 0x3bb   :  { %2678 = vmatprep.mubr.msk.f32.mxu1 %vm1105_vm14, %v1089_v3  ;;  %v1092_v24 = vmul.f32 %v2651_v22, %v3620_v21 }
 0x3bc   :  { %v1020_v25 = vpop.f32.mrf.mxu0  ;;  %2679 = vmatmul.mubr.msk.f32.vlgmr.msra.gmra.mxu1 %vm1105_vm14, %v1090_v12 }
 0x3bd   :  { %v1091_v26 = vmul.f32 %v3623_v23, %v1020_v25  ;;  %2729 = vmatpush3.msk.msra.mxu1 %vm3516_vm7, %v2922_v35  ;;  %vm553_vm7 = vcmp.eq.s32.totalorder %v536_v61, %v3594_v60 }
 0x3be   :  { %v2654_v47 = vpop.f32.mrf.mxu0  ;;  %2730 = vmatprep.subr.msk.mxu1 %vm3530_vm8, %v2922_v35  ;;  %v3698_v22 = vsel %vm553_vm7, 1.0, %v2920_v55 }
 0x3bf   :  { %2681 = vmatprep.mubr.msk.f32.mxu1 %vm1105_vm14, %v1091_v26  ;;  %2731 = vmatpush3.msk.msra.mxu1 %vm3530_vm8, %v2922_v35  ;;  %v1094_v28 = vmul.f32 %v2654_v47, %v3634_v27  ;;  %vm552_vm8 = vcmp.eq.s32.totalorder %v535_v1, %v3594_v60 }
 0x3c0   :  { %v1030_v38 = vpop.f32.mrf.mxu0  ;;  %2682 = vmatmul.mubr.msk.f32.gmra.mxu1 %vm1105_vm14, %v1092_v24  ;;  %2732 = vmatprep.subr.msk.mxu1 %vm3542_vm9, %v2922_v35  ;;  %v2278_v33 = vsel %vm552_vm8, 1.0, %v2920_v55 }
 0x3c1   :  { %v1093_v57 = vmul.f32 %v3640_v18, %v1030_v38  ;;  %2733 = vmatpush3.msk.msra.mxu1 %vm3542_vm9, %v2922_v35  ;;  %vm555_vm9 = vcmp.eq.s32.totalorder %v538_v59, %v3594_v60  ;;  %v2283_v38 = vsel %vm557_vm5, 1.0, %v2920_v55 }
 0x3c2   :  { %v2657_v51 = vpop.f32.mrf.mxu0  ;;  %2734 = vmatprep.subr.msk.mxu1 %vm3556_vm10, %v2922_v35  ;;  %v2281_v47 = vsel %vm555_vm9, 1.0, %v2920_v55 }
 0x3c3   :  { %2684 = vmatprep.mubr.msk.f32.mxu1 %vm1105_vm14, %v1093_v57  ;;  %2735 = vmatpush3.msk.msra.mxu1 %vm3556_vm10, %v2922_v35  ;;  %v1096_v37 = vmul.f32 %v2657_v51, %v3660_v58  ;;  %vm554_vm10 = vcmp.eq.s32.totalorder %v537_v34, %v3594_v60  ;;  %v2282_v51 = vsel %vm556_vm11, 1.0, %v2920_v55 }
 0x3c4   :  { %v1040_v2 = vpop.f32.mrf.mxu0  ;;  %2685 = vmatmul.mubr.msk.f32.gmra.mxu1 %vm1105_vm14, %v1094_v28  ;;  %2795 = vmatprep.subr.mxu1 %v2920_v55  ;;  %v2280_v31 = vsel %vm554_vm10, 1.0, %v2920_v55 }
 0x3c5   :  { %v1095_v63 = vmul.f32 %v3666_v36, %v1040_v2 }
 0x3c6   :  { %v2660_v10 = vpop.f32.mrf.mxu0 }
 0x3c7   :  { %2687 = vmatprep.mubr.msk.f32.mxu1 %vm1105_vm14, %v1095_v63  ;;  %v1098_v12 = vmul.f32 %v2660_v10, %v3684_v6 }
 0x3c8   :  { %v1050_v30 = vpop.f32.mrf.mxu0  ;;  %2688 = vmatmul.mubr.msk.f32.gmra.mxu1 %vm1105_vm14, %v1096_v37 }
 0x3c9   :  { %v1097_v3 = vmul.f32 %v3687_v32, %v1050_v30 }
 0x3ca   :  { %v2663_v39 = vpop.f32.mrf.mxu0 }
 0x3cb   :  { %2690 = vmatprep.mubr.msk.f32.mxu1 %vm1105_vm14, %v1097_v3  ;;  %v1100_v24 = vmul.f32 %v2663_v39, %v3698_v22 }
 0x3cc   :  { %v1060_v25 = vpop.f32.mrf.mxu0  ;;  %2691 = vmatmul.mubr.msk.f32.gmra.mxu1 %vm1105_vm14, %v1098_v12 }
 0x3cd   :  { %v1099_v26 = vmul.f32 %v2278_v33, %v1060_v25 }
 0x3ce   :  { %v2666_v41 = vpop.f32.mrf.mxu0 }
 0x3cf   :  { %2693 = vmatprep.mubr.msk.f32.mxu1 %vm1105_vm14, %v1099_v26  ;;  %v1102_v14 = vmul.f32 %v2666_v41, %v2281_v47 }
 0x3d0   :  { %v1070_v28 = vpop.f32.mrf.mxu0  ;;  %2694 = vmatmul.mubr.msk.f32.gmra.mxu1 %vm1105_vm14, %v1100_v24 }
 0x3d1   :  { %v1101_v7 = vmul.f32 %v2280_v31, %v1070_v28 }
 0x3d2   :  { %v2669_v57 = vpop.f32.mrf.mxu0 }
 0x3d3   :  { %2696 = vmatprep.mubr.msk.f32.mxu1 %vm1105_vm14, %v1101_v7  ;;  %v1104_v61 = vmul.f32 %v2669_v57, %v2283_v38 }
 0x3d4   :  { %v1080_v1 = vpop.f32.mrf.mxu0  ;;  %2697 = vmatmul.mubr.msk.f32.gmra.mxu1 %vm1105_vm14, %v1102_v14 }
 0x3d5   :  { %v1103_v37 = vmul.f32 %v2282_v51, %v1080_v1 }
 0x3d7   :  { %2699 = vmatprep.mubr.msk.f32.mxu1 %vm1105_vm14, %v1103_v37 }
 0x3d8   :  { %2700 = vmatmul.mubr.msk.f32.gmra.mxu1 %vm1105_vm14, %v1104_v61 }
 0x3e1   :  { %v2706_v60 = vpop.f32.mrf.mxu0 }
 0x3e2   :  { %v1449_v10 = vmul.f32 %v2706_v60, %v3608_v29 }
 0x3e3   :  { %v1369_v2 = vpop.f32.mrf.mxu0 }
 0x3e4   :  { %v1448_v63 = vmul.f32 %v3611_v9, %v1369_v2 }
 0x3e5   :  { %v2709_v59 = vpop.f32.mrf.mxu0 }
 0x3e6   :  { %2736 = vmatprep.mubr.msk.f32.mxu1 %vm1105_vm14, %v1448_v63  ;;  %v1451_v30 = vmul.f32 %v2709_v59, %v3620_v21  ;;  %v1870_v59 = vld [vmem:[%s4143_s8 + $0x78] sm:$0xff] }
 0x3e7   :  { %v1379_v34 = vpop.f32.mrf.mxu0  ;;  %2737 = vmatmul.mubr.msk.f32.vlgmr.msra.gmra.mxu1 %vm1105_vm14, %v1449_v10 }
 0x3e8   :  { %v1450_v12 = vmul.f32 %v3623_v23, %v1379_v34  ;;  %v1869_v34 = vld [vmem:[%s4143_s8 + $0x70] sm:$0xff]  ;;  %2796 = vmatpush3.msra.mxu1 %v1870_v59 }
 0x3e9   :  { %v2712_v3 = vpop.f32.mrf.mxu0  ;;  %2797 = vmatprep.subr.mxu1 %v2920_v55 }
 0x3ea   :  { %2739 = vmatprep.mubr.msk.f32.mxu1 %vm1105_vm14, %v1450_v12  ;;  %v1453_v29 = vmul.f32 %v2712_v3, %v3634_v27  ;;  %v1658_v12 = vld [vmem:[%s4142_s7 + $0x18] sm:$0xff]  ;;  %v1868_v3 = vld [vmem:[%s4143_s8 + $0x68] sm:$0xff]  ;;  %2798 = vmatpush3.msra.mxu1 %v1869_v34 }
 0x3eb   :  { %v1389_v39 = vpop.f32.mrf.mxu0  ;;  %2740 = vmatmul.mubr.msk.f32.gmra.mxu1 %vm1105_vm14, %v1451_v30  ;;  %2799 = vmatprep.subr.mxu1 %v2920_v55  ;;  %v1666_v34 = vld [vmem:[%s4142_s7 + $0x58] sm:$0xff] }
 0x3ec   :  { %v1452_v9 = vmul.f32 %v3640_v18, %v1389_v39  ;;  %v1657_v39 = vld [vmem:[%s4142_s7 + $0x10] sm:$0xff]  ;;  %2800 = vmatpush3.msra.mxu1 %v1868_v3 }
 0x3ed   :  { %v2715_v5 = vpop.f32.mrf.mxu0  ;;  %2801 = vmatprep.subr.mxu1 %v2920_v55 }
 0x3ee   :  { %2742 = vmatprep.mubr.msk.f32.mxu1 %vm1105_vm14, %v1452_v9  ;;  %v1455_v21 = vmul.f32 %v2715_v5, %v3660_v58  ;;  %v1867_v9 = vld [vmem:[%s4143_s8 + $0x60] sm:$0xff]  ;;  %v1660_v5 = vld [vmem:[%s4142_s7 + $0x28] sm:$0xff] }
 0x3ef   :  { %v1399_v13 = vpop.f32.mrf.mxu0  ;;  %2743 = vmatmul.mubr.msk.f32.gmra.mxu1 %vm1105_vm14, %v1453_v29  ;;  %v1672_v29 = vmul.f32 %v3570_v17, %v1658_v12  ;;  %v1659_v17 = vld [vmem:[%s4142_s7 + $0x20] sm:$0xff]  ;;  %v1860_v12 = vld [vmem:[%s4143_s8 + $0x28] sm:$0xff] }
 0x3f0   :  { %v1454_v23 = vmul.f32 %v3666_v36, %v1399_v13  ;;  %2802 = vmatpush3.msra.mxu1 %v1867_v9  ;;  %v1680_v9 = vmul.f32 %v3586_v52, %v1666_v34  ;;  %v1858_v52 = vld [vmem:[%s4143_s8 + $0x18] sm:$0xff] }
 0x3f1   :  { %v2718_v24 = vpop.f32.mrf.mxu0  ;;  %2803 = vmatprep.subr.mxu1 %v2920_v55 }
 0x3f2   :  { %2745 = vmatprep.mubr.msk.f32.mxu1 %vm1105_vm14, %v1454_v23  ;;  %v1457_v27 = vmul.f32 %v2718_v24, %v3684_v6  ;;  %v1866_v23 = vld [vmem:[%s4143_s8 + $0x58] sm:$0xff]  ;;  %v1865_v24 = vld [vmem:[%s4143_s8 + $0x50] sm:$0xff] }
 0x3f3   :  { %v1409_v25 = vpop.f32.mrf.mxu0  ;;  %2746 = vmatmul.mubr.msk.f32.gmra.mxu1 %vm1105_vm14, %v1455_v21  ;;  %v1671_v21 = vmul.f32 %v1657_v39, %v3572_v40 }
 0x3f4   :  { %v1456_v18 = vmul.f32 %v3687_v32, %v1409_v25  ;;  %v1687_v25 = vmul.f32 1.442695, %v1672_v29  ;;  %2804 = vmatpush3.msra.mxu1 %v1866_v23  ;;  %v1859_v29 = vld [vmem:[%s4143_s8 + $0x20] sm:$0xff]  ;;  %v1668_v23 = vld [vmem:[%s4142_s7 + $0x68] sm:$0xff] }
 0x3f5   :  { %v2721_v26 = vpop.f32.mrf.mxu0  ;;  %2805 = vmatprep.subr.mxu1 %v2920_v55 }
 0x3f6   :  { %2748 = vmatprep.mubr.msk.f32.mxu1 %vm1105_vm14, %v1456_v18  ;;  %v1459_v36 = vmul.f32 %v2721_v26, %v3698_v22  ;;  %v3747_v22 = vpop.f32.mrf.mxu1  ;;  %v1674_v18 = vmul.f32 %v3574_v42, %v1660_v5  ;;  %v1864_v26 = vld [vmem:[%s4143_s8 + $0x48] sm:$0xff]  ;;  %2806 = vmatpush3.msra.mxu1 %v1865_v24  ;;  %v1661_v42 = vld [vmem:[%s4142_s7 + $0x30] sm:$0xff]  ;;  %2882 = vpow2.f32 %v1687_v25  ;;  %v1667_v24 = vld [vmem:[%s4142_s7 + $0x60] sm:$0xff] }
 0x3f7   :  { %v1419_v41 = vpop.f32.mrf.mxu0  ;;  %2749 = vmatmul.mubr.msk.f32.gmra.mxu1 %vm1105_vm14, %v1457_v27  ;;  %v1662_v27 = vld [vmem:[%s4142_s7 + $0x38] sm:$0xff]  ;;  %2807 = vmatprep.subr.mxu1 %v2920_v55 }
 0x3f8   :  { %v1458_v14 = vmul.f32 %v2278_v33, %v1419_v41  ;;  %v3749_v33 = vpop.f32.mrf.mxu1  ;;  %v1685_v41 = vmul.f32 1.442695, %v1671_v21  ;;  %2808 = vmatpush3.msra.mxu1 %v1864_v26 }
 0x3f9   :  { %v2724_v58 = vpop.f32.mrf.mxu0  ;;  %2809 = vmatprep.subr.mxu1 %v2920_v55 }
 0x3fa   :  { %2751 = vmatprep.mubr.msk.f32.mxu1 %vm1105_vm14, %v1458_v14  ;;  %v1461_v57 = vmul.f32 %v2724_v58, %v2281_v47  ;;  %v3751_v37 = vpop.f32.mrf.mxu1  ;;  %v1673_v14 = vmul.f32 %v1659_v17, %v3576_v43  ;;  %v1691_v58 = vmul.f32 1.442695, %v1674_v18  ;;  %v1664_v43 = vld [vmem:[%s4142_s7 + $0x48] sm:$0xff]  ;;  %2884 = vpow2.f32 %v1685_v41 }
 0x3fb   :  { %v1429_v28 = vpop.f32.mrf.mxu0  ;;  %2752 = vmatmul.mubr.msk.f32.gmra.mxu1 %vm1105_vm14, %v1459_v36  ;;  %v1863_v36 = vld [vmem:[%s4143_s8 + $0x40] sm:$0xff]  ;;  %v1678_v59 = vmul.f32 %v3582_v49, %v1664_v43  ;;  %v1665_v49 = vld [vmem:[%s4142_s7 + $0x50] sm:$0xff]  ;;  %v1703_v18 = vmul.f32 1.442695, %v1680_v9 }
 0x3fc   :  { %v1460_v7 = vmul.f32 %v2280_v31, %v1429_v28  ;;  %v3753_v31 = vpop.f32.mrf.mxu1  ;;  %v1676_v28 = vmul.f32 %v3578_v44, %v1662_v27  ;;  %2810 = vmatpush3.msra.mxu1 %v1863_v36  ;;  %v1663_v44 = vld [vmem:[%s4142_s7 + $0x40] sm:$0xff]  ;;  %2886 = vpow2.f32 %v1691_v58  ;;  %v1669_v43 = vld [vmem:[%s4142_s7 + $0x70] sm:$0xff] }
 0x3fd   :  { %v2727_v32 = vpop.f32.mrf.mxu0  ;;  %2811 = vmatprep.subr.mxu1 %v2920_v55  ;;  %v1677_v39 = vmul.f32 %v1663_v44, %v3584_v50  ;;  %v1699_v5 = vmul.f32 1.442695, %v1678_v59  ;;  %v1679_v50 = vmul.f32 %v1665_v49, %v3588_v54  ;;  %v1682_v54 = vmul.f32 %v3590_v56, %v1668_v23 }
 0x3fe   :  { %2754 = vmatprep.mubr.msk.f32.mxu1 %vm1105_vm14, %v1460_v7  ;;  %v1463_v1 = vmul.f32 %v2727_v32, %v2283_v38  ;;  %v3755_v47 = vpop.f32.mrf.mxu1  ;;  %v1689_v32 = vmul.f32 1.442695, %v1673_v14  ;;  %v1683_v59 = vmul.f32 %v1669_v43, %v3605_v4 }
 0x3ff   :  { %v1439_v6 = vpop.f32.mrf.mxu0  ;;  %2755 = vmatmul.mubr.msk.f32.gmra.mxu1 %vm1105_vm14, %v1461_v57  ;;  %v1862_v57 = vld [vmem:[%s4143_s8 + $0x38] sm:$0xff]  ;;  %v1697_v17 = vmul.f32 1.442695, %v1677_v39  ;;  %v1701_v14 = vmul.f32 1.442695, %v1679_v50 }
 0x400   :  { %v1462_v61 = vmul.f32 %v2282_v51, %v1439_v6  ;;  %v3757_v60 = vpop.f32.mrf.mxu1  ;;  %v1675_v6 = vmul.f32 %v1661_v42, %v3580_v45  ;;  %2812 = vmatpush3.msra.mxu1 %v1862_v57  ;;  %2888 = vpow2.f32 %v1689_v32  ;;  %v1681_v42 = vmul.f32 %v1667_v24, %v3597_v62 }
 0x401   :  { %2813 = vmatprep.subr.mxu1 %v2920_v55  ;;  %v1709_v4 = vmul.f32 1.442695, %v1683_v59 }
 0x402   :  { %2757 = vmatprep.mubr.msk.f32.mxu1 %vm1105_vm14, %v1462_v61  ;;  %v3759_v2 = vpop.f32.mrf.mxu1  ;;  %v1861_v61 = vld [vmem:[%s4143_s8 + $0x30] sm:$0xff]  ;;  %v1693_v3 = vmul.f32 1.442695, %v1675_v6 }
 0x403   :  { %2758 = vmatmul.mubr.msk.f32.gmra.mxu1 %vm1105_vm14, %v1463_v1  ;;  %v1695_v1 = vmul.f32 1.442695, %v1676_v28  ;;  %v2883_v41 = vpop.eup %2882 }
 0x404   :  { %v3761_v51 = vpop.f32.mrf.mxu1  ;;  %2827 = vmatprep.mubr.msk.f32.mxu1 %vm2923_vm12, %v2920_v55  ;;  %2814 = vmatpush3.msra.mxu1 %v1861_v61 }
 0x405   :  { %2815 = vmatprep.subr.mxu1 %v2920_v55  ;;  %2890 = vpow2.f32 %v1695_v1  ;;  %v1705_v1 = vmul.f32 1.442695, %v1681_v42 }
 0x406   :  { %v3763_v38 = vpop.f32.mrf.mxu1  ;;  %2816 = vmatpush3.msra.mxu1 %v1860_v12  ;;  %2892 = vpow2.f32 %v1693_v3 }
 0x407   :  { %2817 = vmatprep.subr.mxu1 %v2920_v55  ;;  %2894 = vpow2.f32 %v1699_v5  ;;  %v2885_v28 = vpop.eup %2884 }
 0x408   :  { %v3765_v63 = vpop.f32.mrf.mxu1  ;;  %2818 = vmatpush3.msra.mxu1 %v1859_v29  ;;  %2896 = vpow2.f32 %v1697_v17 }
 0x409   :  { %2819 = vmatprep.subr.mxu1 %v2920_v55  ;;  %2898 = vpow2.f32 %v1703_v18  ;;  %v2887_v61 = vpop.eup %2886 }
 0x40a   :  { %v3767_v10 = vpop.f32.mrf.mxu1  ;;  %2820 = vmatpush3.msra.mxu1 %v1858_v52  ;;  %2900 = vpow2.f32 %v1701_v14 }
 0x40b   :  { %2821 = vmatprep.subr.mxu1 %v2920_v55 }
 0x40c   :  { %v3782_v30 = vpop.f32.mrf.mxu1 }
 0x40d   :  { %v2889_v39 = vpop.eup %2888 }
 0x40e   :  { %v3799_v13 = vpop.f32.mrf.mxu1 }
 0x410   :  { %v3817_v40 = vpop.f32.mrf.mxu1 }
 0x412   :  { %v3835_v7 = vpop.f32.mrf.mxu1  ;;  %v2891_v5 = vpop.eup %2890 }
 0x413   :  { %v2893_v52 = vpop.eup %2892 }
 0x414   :  { %v3853_v45 = vpop.f32.mrf.mxu1 }
 0x47c   :  { %v2680_v21 = vpop.f32.mrf.mxu1 }
 0x47d   :  { %v3880_v25 = vmul.f32 %v2680_v21, %v3747_v22  ;;  %v1670_v22 = vld [vmem:[%s4142_s7 + $0x78] sm:$0xff] }
 0x47e   :  { %v1220_v27 = vpop.f32.mrf.mxu1  ;;  %v1684_v57 = vmul.f32 %v3599_v0, %v1670_v22 }
 0x47f   :  { %v3885_v26 = vmul.f32 %v1220_v27, %v3749_v33  ;;  %v1730_v56 = vmul.f32 %v2883_v41, %v3880_v25  ;;  %v1707_v33 = vmul.f32 1.442695, %v1682_v54  ;;  %v2895_v54 = vpop.eup %2894 }
 0x480   :  { %v2683_v36 = vpop.f32.mrf.mxu1  ;;  %v1711_v49 = vmul.f32 1.442695, %v1684_v57  ;;  %v2897_v42 = vpop.eup %2896 }
 0x481   :  { %v1716_v58 = vmul.f32 %v2683_v36, %v3751_v37  ;;  %v1729_v32 = vmul.f32 %v2885_v28, %v3885_v26  ;;  %2902 = vpow2.f32 %v1707_v33  ;;  %v2899_v36 = vpop.eup %2898 }
 0x482   :  { %v1230_v62 = vpop.f32.mrf.mxu1  ;;  %2904 = vpow2.f32 %v1705_v1  ;;  %v2901_v33 = vpop.eup %2900 }
 0x483   :  { %v1715_v6 = vmul.f32 %v1230_v62, %v3753_v31  ;;  %v3900_v44 = vadd.f32 %v1730_v56, %v1716_v58  ;;  %2906 = vpow2.f32 %v1711_v49 }
 0x484   :  { %v2686_v37 = vpop.f32.mrf.mxu1  ;;  %2908 = vpow2.f32 %v1709_v4 }
 0x485   :  { %v1718_v34 = vmul.f32 %v2686_v37, %v3755_v47  ;;  %v3904_v12 = vadd.f32 %v1729_v32, %v1715_v6  ;;  %v1734_v3 = vmul.f32 %v2887_v61, %v3900_v44 }
 0x486   :  { %v1240_v0 = vpop.f32.mrf.mxu1 }
 0x487   :  { %v1717_v31 = vmul.f32 %v1240_v0, %v3757_v60  ;;  %v3908_v9 = vadd.f32 %v1734_v3, %v1718_v34  ;;  %v1733_v29 = vmul.f32 %v2889_v39, %v3904_v12 }
 0x488   :  { %v2689_v23 = vpop.f32.mrf.mxu1 }
 0x489   :  { %v1720_v47 = vmul.f32 %v2689_v23, %v3759_v2  ;;  %v3912_v50 = vadd.f32 %v1733_v29, %v1717_v31  ;;  %v1738_v21 = vmul.f32 %v2891_v5, %v3908_v9 }
 0x48a   :  { %v1250_v17 = vpop.f32.mrf.mxu1 }
 0x48b   :  { %v1719_v24 = vmul.f32 %v1250_v17, %v3761_v51  ;;  %v3916_v60 = vadd.f32 %v1738_v21, %v1720_v47  ;;  %v1737_v18 = vmul.f32 %v2893_v52, %v3912_v50 }
 0x48c   :  { %v2692_v27 = vpop.f32.mrf.mxu1 }
 0x48d   :  { %v1722_v41 = vmul.f32 %v2692_v27, %v3763_v38  ;;  %v3920_v14 = vadd.f32 %v1737_v18, %v1719_v24  ;;  %v1742_v2 = vmul.f32 %v2895_v54, %v3916_v60 }
 0x48e   :  { %v1260_v22 = vpop.f32.mrf.mxu1  ;;  %v2903_v32 = vpop.eup %2902 }
 0x48f   :  { %v1721_v56 = vmul.f32 %v1260_v22, %v3765_v63  ;;  %v3924_v58 = vadd.f32 %v1742_v2, %v1722_v41  ;;  %v1741_v51 = vmul.f32 %v2897_v42, %v3920_v14  ;;  %v2905_v59 = vpop.eup %2904 }
 0x490   :  { %v2695_v28 = vpop.f32.mrf.mxu1  ;;  %v2907_v31 = vpop.eup %2906 }
 0x491   :  { %v1724_v43 = vmul.f32 %v2695_v28, %v3767_v10  ;;  %v1743_v62 = vadd.f32 %v1741_v51, %v1721_v56  ;;  %v1746_v38 = vmul.f32 %v2899_v36, %v3924_v58  ;;  %v2909_v23 = vpop.eup %2908 }
 0x492   :  { %v1270_v57 = vpop.f32.mrf.mxu1 }
 0x493   :  { %v1723_v6 = vmul.f32 %v1270_v57, %v3782_v30  ;;  %v1748_v61 = vadd.f32 %v1746_v38, %v1724_v43  ;;  %v1745_v1 = vmul.f32 %v2901_v33, %v1743_v62 }
 0x494   :  { %v2698_v37 = vpop.f32.mrf.mxu1 }
 0x495   :  { %v1726_v63 = vmul.f32 %v2698_v37, %v3799_v13  ;;  %v1747_v34 = vadd.f32 %v1745_v1, %v1723_v6  ;;  %v1750_v3 = vmul.f32 %v2903_v32, %v1748_v61 }
 0x496   :  { %v1280_v39 = vpop.f32.mrf.mxu1 }
 0x497   :  { %v1725_v0 = vmul.f32 %v1280_v39, %v3817_v40  ;;  %v1752_v49 = vadd.f32 %v1750_v3, %v1726_v63  ;;  %v1749_v10 = vmul.f32 %v2905_v59, %v1747_v34  ;;  %v1953_v3 = vld [vmem:[%s4144_s10 + $0x20] sm:$0xff]  ;;  %v1952_v39 = vld [vmem:[%s4144_s10 + $0x18] sm:$0xff] }
 0x498   :  { %v2701_v47 = vpop.f32.mrf.mxu1 }
 0x499   :  { %v1751_v29 = vadd.f32 %v1749_v10, %v1725_v0  ;;  %v1754_v5 = vmul.f32 %v2907_v31, %v1752_v49  ;;  %v1728_v22 = vmul.f32 %v2701_v47, %v3835_v7  ;;  %v1951_v0 = vld [vmem:[%s4144_s10 + $0x10] sm:$0xff]  ;;  %v1848_v10 = vsub.f32 0.0, %v3306_v20 }
 0x49a   :  { %v1290_v30 = vpop.f32.mrf.mxu1 }
 0x49b   :  { %v1753_v4 = vmul.f32 %v2909_v23, %v1751_v29  ;;  %v1727_v56 = vmul.f32 %v1290_v30, %v3853_v45  ;;  %v1756_v28 = vadd.f32 %v1754_v5, %v1728_v22  ;;  %v1849_v31 = vmul.f32 1.442695, %v1848_v10  ;;  %v1873_v22 = vld [vmem:[%s4145_s9 + $0x10] sm:$0xff] }
 0x49c   :  { %v1775_v23 = vsub.s32 6, %v3011_v8 }
 0x49d   :  { %v1755_v38 = vadd.f32 %v1753_v4, %v1727_v56  ;;  %2910 = vpow2.f32 %v1849_v31  ;;  %v2914_v4 = vld [vmem:[%s4141_s3] sm:$0x7f] }
 0x49e   :  { %v1776_v47 = vrot.slane %v2914_v4, %v1775_v23  ;;  %v1871_v56 = vld [vmem:[%s4145_s9] sm:$0xff] }
 0x4a7   :  { %v2738_v21 = vpop.f32.mrf.mxu1 }
 0x4a9   :  { %v3932_v52 = vpop.f32.mrf.mxu1 }
 0x4ab   :  { %v2741_v17 = vpop.f32.mrf.mxu1 }
 0x4ad   :  { %v1588_v24 = vpop.f32.mrf.mxu1 }
 0x4af   :  { %v2744_v13 = vpop.f32.mrf.mxu1 }
 0x4b1   :  { %v1598_v18 = vpop.f32.mrf.mxu1 }
 0x4b3   :  { %v2747_v54 = vpop.f32.mrf.mxu1 }
 0x4b4   :  { %v1764_v63 = vmul.f32 %v2747_v54, %v3916_v60  ;;  %v1760_v60 = vmul.f32 %v2741_v17, %v3900_v44  ;;  %v1955_v44 = vld [vmem:[%s4144_s10 + $0x30] sm:$0xff] }
 0x4b5   :  { %v1608_v27 = vpop.f32.mrf.mxu1 }
 0x4b7   :  { %v2750_v41 = vpop.f32.mrf.mxu1 }
 0x4b8   :  { %v1766_v37 = vmul.f32 %v2750_v41, %v3924_v58  ;;  %v1761_v58 = vmul.f32 %v3912_v50, %v1598_v18  ;;  %v1757_v50 = vmul.f32 %v3885_v26, %v3932_v52  ;;  %v1956_v26 = vld [vmem:[%s4144_s10 + $0x38] sm:$0xff]  ;;  %v1877_v41 = vld [vmem:[%s4145_s9 + $0x30] sm:$0xff] }
 0x4b9   :  { %v1618_v40 = vpop.f32.mrf.mxu1 }
 0x4ba   :  { %v1765_v59 = vmul.f32 %v1743_v62, %v1618_v40  ;;  %v603_v62 = vshra.s32 %v3289_v16, 4  ;;  %v1857_v16 = vld [vmem:[%s4143_s8 + $0x10] sm:$0xff]  ;;  %v1876_v40 = vld [vmem:[%s4145_s9 + $0x28] sm:$0xff] }
 0x4bb   :  { %v2753_v2 = vpop.f32.mrf.mxu1  ;;  %2822 = vmatpush3.msra.mxu1 %v1857_v16 }
 0x4bc   :  { %v1768_v7 = vmul.f32 %v2753_v2, %v1748_v61  ;;  %v1763_v61 = vmul.f32 %v3920_v14, %v1608_v27  ;;  %v1759_v14 = vmul.f32 %v3904_v12, %v1588_v24  ;;  %vm604_vm13 = vcmp.eq.s32.totalorder %v3011_v8, %v603_v62  ;;  %2823 = vmatprep.subr.mxu1 %v2920_v55  ;;  %v1954_v12 = vld [vmem:[%s4144_s10 + $0x28] sm:$0xff]  ;;  %v1949_v8 = vld [vmem:[%s4144_s10] sm:$0xff] }
 0x4bd   :  { %v1628_v42 = vpop.f32.mrf.mxu1  ;;  %v1875_v2 = vld [vmem:[%s4145_s9 + $0x20] sm:$0xff] }
 0x4be   :  { %v1767_v45 = vmul.f32 %v1747_v34, %v1628_v42  ;;  %v1762_v34 = vmul.f32 %v2744_v13, %v3908_v9  ;;  %v1758_v9 = vmul.f32 %v2738_v21, %v3880_v25  ;;  %v1856_v25 = vld [vmem:[%s4143_s8 + $0x8] sm:$0xff]  ;;  %v1777_v21 = vmul.f32 %v1776_v47, %v3285_v15  ;;  %v1878_v15 = vld [vmem:[%s4145_s9 + $0x38] sm:$0xff] }
 0x4bf   :  { %v2756_v36 = vpop.f32.mrf.mxu1  ;;  %2824 = vmatpush3.msra.mxu1 %v1856_v25  ;;  %v1874_v42 = vld [vmem:[%s4145_s9 + $0x18] sm:$0xff] }
 0x4c0   :  { %v1770_v6 = vmul.f32 %v2756_v36, %v1752_v49  ;;  %2825 = vmatprep.subr.mxu1 %v2920_v55  ;;  %v1950_v49 = vld [vmem:[%s4144_s10 + $0x8] sm:$0xff] }
 0x4c1   :  { %v1638_v51 = vpop.f32.mrf.mxu1  ;;  %v1872_v36 = vld [vmem:[%s4145_s9 + $0x8] sm:$0xff] }
 0x4c2   :  { %v1769_v1 = vmul.f32 %v1751_v29, %v1638_v51  ;;  %v2911_v29 = vpop.eup %2910  ;;  %v2126_v51 = vld [vmem:[%s4146_s11 + $0x78] sm:$0xff] }
 0x4c3   :  { %v2759_v33 = vpop.f32.mrf.mxu1  ;;  %v1851_v5 = vadd.f32 1.0, %v2911_v29 }
 0x4c4   :  { %v1772_v43 = vmul.f32 %v2759_v33, %v1756_v28  ;;  %v2125_v28 = vld [vmem:[%s4146_s11 + $0x70] sm:$0xff]  ;;  %v2124_v33 = vld [vmem:[%s4146_s11 + $0x68] sm:$0xff] }
 0x4c5   :  { %v1648_v57 = vpop.f32.mrf.mxu1  ;;  %2912 = vrcp.f32 %v1851_v5 }
 0x4c6   :  { %v1771_v32 = vmul.f32 %v1755_v38, %v1648_v57  ;;  %2761 = vmatpush3.msra.mxu0 %v1772_v43  ;;  %v2121_v43 = vld [vmem:[%s4146_s11 + $0x50] sm:$0xff]  ;;  %v2120_v38 = vld [vmem:[%s4146_s11 + $0x48] sm:$0xff]  ;;  %v2119_v57 = vld [vmem:[%s4146_s11 + $0x40] sm:$0xff] }
 0x4c7   :  { %2762 = vmatprep.subr.mxu0 %v2920_v55 }
 0x4c8   :  { %2763 = vmatpush3.msra.mxu0 %v1771_v32  ;;  %v2118_v32 = vld [vmem:[%s4146_s11 + $0x38] sm:$0xff] }
 0x4c9   :  { %2764 = vmatprep.subr.mxu0 %v2920_v55 }
 0x4ca   :  { %2765 = vmatpush3.msra.mxu0 %v1770_v6  ;;  %v2117_v6 = vld [vmem:[%s4146_s11 + $0x30] sm:$0xff] }
 0x4cb   :  { %2766 = vmatprep.subr.mxu0 %v2920_v55 }
 0x4cc   :  { %2767 = vmatpush3.msra.mxu0 %v1769_v1  ;;  %v2116_v1 = vld [vmem:[%s4146_s11 + $0x28] sm:$0xff] }
 0x4cd   :  { %2768 = vmatprep.subr.mxu0 %v2920_v55 }
 0x4ce   :  { %2769 = vmatpush3.msra.mxu0 %v1768_v7  ;;  %v2115_v7 = vld [vmem:[%s4146_s11 + $0x20] sm:$0xff] }
 0x4cf   :  { %2770 = vmatprep.subr.mxu0 %v2920_v55 }
 0x4d0   :  { %2771 = vmatpush3.msra.mxu0 %v1767_v45  ;;  %v2114_v45 = vld [vmem:[%s4146_s11 + $0x18] sm:$0xff] }
 0x4d1   :  { %2772 = vmatprep.subr.mxu0 %v2920_v55 }
 0x4d2   :  { %2773 = vmatpush3.msra.mxu0 %v1766_v37  ;;  %v2913_v30 = vpop.eup %2912  ;;  %v2113_v37 = vld [vmem:[%s4146_s11 + $0x10] sm:$0xff] }
 0x4d3   :  { %2774 = vmatprep.subr.mxu0 %v2920_v55  ;;  %v1853_v17 = vmul.f32 %v2913_v30, %v3306_v20 }
 0x4d4   :  { %2775 = vmatpush3.msra.mxu0 %v1765_v59  ;;  %v2112_v59 = vld [vmem:[%s4146_s11 + $0x8] sm:$0xff] }
 0x4d5   :  { %2776 = vmatprep.subr.mxu0 %v2920_v55 }
 0x4d6   :  { %2777 = vmatpush3.msra.mxu0 %v1764_v63  ;;  %v2111_v63 = vld [vmem:[%s4146_s11] sm:$0xff] }
 0x4d7   :  { %2778 = vmatprep.subr.mxu0 %v2920_v55 }
 0x4d8   :  { %2779 = vmatpush3.msra.mxu0 %v1763_v61 }
 0x4d9   :  { %2780 = vmatprep.subr.mxu0 %v2920_v55 }
 0x4da   :  { %2781 = vmatpush3.msra.mxu0 %v1762_v34 }
 0x4db   :  { %2782 = vmatprep.subr.mxu0 %v2920_v55 }
 0x4dc   :  { %2783 = vmatpush3.msra.mxu0 %v1761_v58  ;;  %v2915_v58 = vld [vmem:[%s4139_s2] sm:$0xf] }
 0x4dd   :  { %2784 = vmatprep.subr.mxu0 %v2920_v55 }
 0x4de   :  { %2785 = vmatpush3.msra.mxu0 %v1760_v60  ;;  %v2103_v60 = vrot.slane %v2915_v58, %v3280_v53 }
 0x4df   :  { %2786 = vmatprep.subr.mxu0 %v2920_v55 }
 0x4e0   :  { %2787 = vmatpush3.msra.mxu0 %v1759_v14 }
 0x4e1   :  { %2788 = vmatprep.subr.mxu0 %v2920_v55 }
 0x4e2   :  { %2789 = vmatpush3.msra.mxu0 %v1758_v9  ;;  %v2108_v9 = vrot.slane %v2915_v58, %v3266_v46 }
 0x4e3   :  { %2790 = vmatprep.subr.mxu0 %v2920_v55 }
 0x4e4   :  { %2791 = vmatpush3.msra.mxu0 %v1757_v50 }
 0x4e5   :  { %2793 = vmatmul.mubr.msk.f32.vlgmr.msra.gmra.mxu0 %vm604_vm13, %v2922_v35  ;;  %2830 = vmatprep.subr.mxu0 %v2920_v55  ;;  %v1855_v35 = vld [vmem:[%s4143_s8] sm:$0xff] }
 0x4e6   :  { %2846 = vmatprep.mubr.msk.f32.mxu0 %vm2923_vm12, %v2920_v55  ;;  %2826 = vmatpush3.msra.mxu1 %v1855_v35 }
 0x4e7   :  { %2831 = vmatpush3.msra.mxu0 %v1956_v26  ;;  %2146 = vmatprep.subr.mxu1 %v2126_v51  ;;  %v2916_v26 = vld [vmem:[%s4137_s1] sm:$0x3f] }
 0x4e8   :  { %2832 = vmatprep.subr.mxu0 %v2920_v55  ;;  %v2224_v10 = vrot.slane %v2916_v26, %v3272_v48  ;;  %v2234_v23 = vrot.slane %v2916_v26, %v3303_v19 }
 0x4e9   :  { %2833 = vmatpush3.msra.mxu0 %v1955_v44  ;;  %v2204_v44 = vrot.slane %v2916_v26, %v3280_v53 }
 0x4ea   :  { %2834 = vmatprep.subr.mxu0 %v2920_v55 }
 0x4eb   :  { %2835 = vmatpush3.msra.mxu0 %v1954_v12  ;;  %v2214_v12 = vrot.slane %v2916_v26, %v3266_v46 }
 0x4ec   :  { %2836 = vmatprep.subr.mxu0 %v2920_v55 }
 0x4ed   :  { %2837 = vmatpush3.msra.mxu0 %v1953_v3  ;;  %v2917_v3 = vld [vmem:[%s4137_s1 + $0x8] sm:$0x3f] }
 0x4ee   :  { %2838 = vmatprep.subr.mxu0 %v2920_v55  ;;  %v2218_v31 = vrot.slane %v2917_v3, %v3266_v46  ;;  %v2228_v47 = vrot.slane %v2917_v3, %v3272_v48  ;;  %v2919_v48 = vld [vmem:[%s4136_s0 + $0x8] sm:$0xff] }
 0x4ef   :  { %2839 = vmatpush3.msra.mxu0 %v1952_v39  ;;  %v2208_v39 = vrot.slane %v2917_v3, %v3280_v53 }
 0x4f0   :  { %2840 = vmatprep.subr.mxu0 %v2920_v55 }
 0x4f1   :  { %2841 = vmatpush3.msra.mxu0 %v1951_v0 }
 0x4f2   :  { %2842 = vmatprep.subr.mxu0 %v2920_v55 }
 0x4f3   :  { %2843 = vmatpush3.msra.mxu0 %v1950_v49 }
 0x4f4   :  { %2844 = vmatprep.subr.mxu0 %v2920_v55 }
 0x4f5   :  { %2845 = vmatpush3.msra.mxu0 %v1949_v8 }
 0x4f6   :  { %2849 = vmatprep.subr.mxu0 %v2920_v55 }
 0x5a5   :  { %v1844_v52 = vpop.f32.mrf.mxu0 }
 0x5a6   :  { %v1845_v24 = vadd.f32 %v1844_v52, %v1777_v21  ;;  %v2238_v52 = vrot.slane %v2917_v3, %v3303_v19 }
 0x5a7   :  { %v2794_v13 = vpop.f32.mrf.mxu0 }
 0x5a8   :  { %v1854_v18 = vmul.f32 %v1853_v17, %v1845_v24 }
 0x5aa   :  { %2828 = vmatmul.mubr.f32.vlgmr.msra.gmra.mxu1 %v1854_v18  ;;  %v2918_v18 = vld [vmem:[%s4136_s0] sm:$0xff] }
 0x5ab   :  { %2194 = vmatprep.mubr.f32.mxu1 %v2920_v55  ;;  %2147 = vmatpush1.msra.mxu1 %v2125_v28 }
 0x5ac   :  { %2148 = vmatprep.subr.mxu1 %v2124_v33 }
 0x66a   :  { %v1945_v54 = vpop.f32.mrf.mxu1 }
 0x66b   :  { %v1946_v27 = vadd.f32 %v3164_v11, %v1945_v54 }
 0x66c   :  { %v2829_v20 = vpop.f32.mrf.mxu1 }
 0x66d   :  { %2847 = vmatmul.mubr.msk.f32.vlgmr.msra.gmra.mxu0 %vm196_vm0, %v1946_v27 }
 0x66e   :  { %2850 = vmatpush3.msra.mxu0 %v1878_v15  ;;  %2865 = vmatprep.mubr.msk.f32.mxu0 %vm2923_vm12, %v2920_v55 }
 0x66f   :  { %2851 = vmatprep.subr.mxu0 %v2920_v55 }
 0x670   :  { %2852 = vmatpush3.msra.mxu0 %v1877_v41 }
 0x671   :  { %2853 = vmatprep.subr.mxu0 %v2920_v55 }
 0x672   :  { %2854 = vmatpush3.msra.mxu0 %v1876_v40 }
 0x673   :  { %2855 = vmatprep.subr.mxu0 %v2920_v55 }
 0x674   :  { %2856 = vmatpush3.msra.mxu0 %v1875_v2 }
 0x675   :  { %2857 = vmatprep.subr.mxu0 %v2920_v55 }
 0x676   :  { %2858 = vmatpush3.msra.mxu0 %v1874_v42 }
 0x677   :  { %2859 = vmatprep.subr.mxu0 %v2920_v55 }
 0x678   :  { %2860 = vmatpush3.msra.mxu0 %v1873_v22 }
 0x679   :  { %2861 = vmatprep.subr.mxu0 %v2920_v55 }
 0x67a   :  { %2862 = vmatpush3.msra.mxu0 %v1872_v36 }
 0x67b   :  { %2863 = vmatprep.subr.mxu0 %v2920_v55  ;;  %v2123_v55 = vld [vmem:[%s4146_s11 + $0x60] sm:$0xff] }
 0x67c   :  { %2864 = vmatpush3.msra.mxu0 %v1871_v56  ;;  %2149 = vmatpush1.msra.mxu1 %v2123_v55 }
 0x67d   :  { %2866 = vmatmul.mubr.msk.f32.vlgmr.msra.gmra.mxu0 %vm196_vm0, %v3164_v11  ;;  %v2122_v11 = vld [vmem:[%s4146_s11 + $0x58] sm:$0xff] }
 0x67e   :  { %2150 = vmatprep.subr.mxu1 %v2122_v11 }
 0x67f   :  { %2151 = vmatpush1.msra.mxu1 %v2121_v43 }
 0x680   :  { %2152 = vmatprep.subr.mxu1 %v2120_v38 }
 0x681   :  { %2153 = vmatpush1.msra.mxu1 %v2119_v57 }
 0x682   :  { %2154 = vmatprep.subr.mxu1 %v2118_v32 }
 0x683   :  { %2155 = vmatpush1.msra.mxu1 %v2117_v6 }
 0x684   :  { %2156 = vmatprep.subr.mxu1 %v2116_v1 }
 0x685   :  { %2157 = vmatpush1.msra.mxu1 %v2115_v7 }
 0x686   :  { %2158 = vmatprep.subr.mxu1 %v2114_v45 }
 0x687   :  { %2159 = vmatpush1.msra.mxu1 %v2113_v37 }
 0x688   :  { %2160 = vmatprep.subr.mxu1 %v2112_v59 }
 0x689   :  { %2161 = vmatpush1.msra.mxu1 %v2111_v63 }
 0x72d   :  { %v2026_v61 = vpop.f32.mrf.mxu0 }
 0x72f   :  { %v2848_v34 = vpop.f32.mrf.mxu0 }
 0x73d   :  { %v2096_v14 = vpop.f32.mrf.mxu0 }
 0x73e   :  { %v2097_v62 = vadd.f32 %v2096_v14, %v2026_v61 }
 0x73f   :  { %v2867_v50 = vpop.f32.mrf.mxu0 }
 0x740   :  { %v2104_v16 = vmul.f32 %v2103_v60, %v2097_v62 }
 0x742   :  { %v2109_v25 = vadd.f32 %v2108_v9, %v2104_v16 }
 0x744   :  { %v2110_v35 = vmax.f32 %v2109_v25, 0.0 }
 0x746   :  { %2396 = vmatmul.mubr.msk.f32.vlgmr.msra.gmra.mxu1 %vm196_vm0, %v2110_v35 }
 0x806   :  { %v2196_v0 = vpop.f32.mrf.mxu1 }
 0x807   :  { %v2209_v49 = vmul.f32 %v2204_v44, %v2196_v0 }
 0x808   :  { %v2198_v29 = vpop.f32.mrf.mxu1 }
 0x809   :  { %v2219_v5 = vadd.f32 %v2214_v12, %v2209_v49  ;;  %v2210_v4 = vmul.f32 %v2208_v39, %v2198_v29 }
 0x80b   :  { %v2229_v30 = vmul.f32 %v2224_v10, %v2219_v5  ;;  %v2220_v21 = vadd.f32 %v2218_v31, %v2210_v4 }
 0x80d   :  { %v2239_v17 = vadd.f32 %v2234_v23, %v2229_v30  ;;  %v2230_v24 = vmul.f32 %v2228_v47, %v2220_v21 }
 0x80f   :  { %v2241_v53 = vmax.f32 %v2239_v17, 0.0  ;;  %v2240_v13 = vadd.f32 %v2238_v52, %v2230_v24 }
 0x811   :  { %v2243_v46 = vmul.f32 %v2918_v18, %v2241_v53  ;;  %v2242_v8 = vmax.f32 %v2240_v13, 0.0 }
 0x813   :  { %2245 = vst [vmem:[%s4147_s12] sm:$0xff] %v2243_v46  ;;  %v2244_v54 = vmul.f32 %v2919_v48, %v2242_v8 }
 0x815   :  { %2246 = vst [vmem:[%s4147_s12 + $0x8] sm:$0xff] %v2244_v54 }

</bundles_post_ra>
